<compile_context>
chip_gen: v7x
topology: tpu7x:2x2x1
jax: 0.10.0
libtpu: 0.0.40
codegen_flags: <defaults>
</compile_context>

<pallas_src>
import functools

import jax
import jax.numpy as jnp
from jax.experimental import pallas as pl
from jax.experimental.pallas import tpu as pltpu

LANE = 128
_VMEM_LIMIT = 32 * 1024 * 1024  # safe scoped-VMEM request on v5e/v6e/v7x


# ---------------------------------------------------------------------------
# Fused (patches @ W) + bias + ReLU + 2x2 max-pool kernel (one image per step)
# ---------------------------------------------------------------------------
def _conv_mm_relu_pool_kernel(x_ref, w_ref, b_ref, o_ref, *, rows, rows_pad):
    """x_ref: (4*rows_pad, Kp) bf16 patch matrix for one image.  Rows are
    ordered as 4 pool groups (dh, dw) of `rows` pooled positions each, padded
    to rows_pad (a multiple of 8) so every group slice is sublane-aligned.
    w_ref: (Kp, 128) bf16,  b_ref: (1, 128) f32,  o_ref: (rows, 128) bf16."""
    y = jnp.dot(x_ref[...], w_ref[...], preferred_element_type=jnp.float32)
    y = jnp.maximum(y + b_ref[...], 0.0)                      # bias + ReLU
    # 2x2 max-pool == element-wise max of the four aligned group slices.
    m = jnp.maximum(
        jnp.maximum(y[0:rows], y[rows_pad:rows_pad + rows]),
        jnp.maximum(y[2 * rows_pad:2 * rows_pad + rows],
                    y[3 * rows_pad:3 * rows_pad + rows]))
    o_ref[...] = m.astype(o_ref.dtype)                        # one lane-dense store


def conv_mm_relu_pool(patches, w, b, *, rows, rows_pad):
    """patches: (B, 4*rows_pad, Kp) bf16  ->  (B, rows, 128) bf16 pooled act."""
    B, R, Kp = patches.shape
    Kp2, Co = w.shape
    assert R == 4 * rows_pad and Kp == Kp2 and Co == LANE and rows_pad % 8 == 0
    kernel = functools.partial(_conv_mm_relu_pool_kernel,
                               rows=rows, rows_pad=rows_pad)
    return pl.pallas_call(
        kernel,
        out_shape=jax.ShapeDtypeStruct((B, rows, LANE), jnp.bfloat16),
        grid=(B,),
        in_specs=[
            pl.BlockSpec((None, R, Kp), lambda i: (i, 0, 0)),
            pl.BlockSpec((Kp, Co), lambda i: (0, 0)),      # weights stay resident
            pl.BlockSpec((1, Co), lambda i: (0, 0)),
        ],
        out_specs=pl.BlockSpec((None, rows, LANE), lambda i: (i, 0, 0)),
        compiler_params=pltpu.CompilerParams(
            dimension_semantics=("parallel",),
            vmem_limit_bytes=_VMEM_LIMIT,
        ),
    )(patches, w, b)


# ---------------------------------------------------------------------------
# Fused fc1 + ReLU + fc2 kernel, tiled over the batch dimension
# ---------------------------------------------------------------------------
def _fc_fused_kernel(x_ref, w1_ref, b1_ref, w2_ref, b2_ref, o_ref):
    """o = relu(x @ w1 + b1) @ w2 + b2 on one (TM, K) row tile."""
    h = jnp.dot(x_ref[...], w1_ref[...], preferred_element_type=jnp.float32)
    h = jnp.maximum(h + b1_ref[...], 0.0)
    y = jnp.dot(h.astype(jnp.bfloat16), w2_ref[...],
                preferred_element_type=jnp.float32)
    o_ref[...] = (y + b2_ref[...]).astype(o_ref.dtype)


def _pick_tile_m(m):
    # Capped at 512: with K=512 a (512,512) bf16 tile is only 512 KiB, so the
    # double-buffered pipeline fits easily in v7x's 32 MiB scoped VMEM while
    # still amortizing per-step overhead on v5e/v6e.
    for t in (512, 256, 128, 64, 32, 16, 8):
        if m % t == 0:
            return t
    return m  # small / odd batch: one full block (equals full dim -> legal)


def fc_fused(x, w1, b1, w2, b2):
    M, K1 = x.shape
    K1b, N1 = w1.shape
    N1b, N2 = w2.shape
    assert K1 == K1b and N1 == N1b
    tm = _pick_tile_m(M)
    return pl.pallas_call(
        _fc_fused_kernel,
        out_shape=jax.ShapeDtypeStruct((M, N2), jnp.float32),
        grid=(M // tm,),
        in_specs=[
            pl.BlockSpec((tm, K1), lambda i: (i, 0)),
            pl.BlockSpec((K1, N1), lambda i: (0, 0)),
            pl.BlockSpec((1, N1), lambda i: (0, 0)),
            pl.BlockSpec((N1, N2), lambda i: (0, 0)),
            pl.BlockSpec((1, N2), lambda i: (0, 0)),
        ],
        out_specs=pl.BlockSpec((tm, N2), lambda i: (i, 0)),
        compiler_params=pltpu.CompilerParams(
            dimension_semantics=("parallel",),
            vmem_limit_bytes=_VMEM_LIMIT,
        ),
    )(x, w1, b1, w2, b2)


# ---------------------------------------------------------------------------
# Wrapper-side im2col (pure layout glue; all FLOPs stay in the Pallas kernels)
# ---------------------------------------------------------------------------
def _im2col_pool_groups(x_nhwc, *, K, rows_pad, k_pad):
    """x: (B, H, W, C) -> (B, 4*rows_pad, k_pad) bf16 patch matrix.

    Conv output (Ho, Wo) = (H-K+1, W-K+1) (assumed even); pooled (Hp, Wp).
    Rows are grouped by the 2x2 pool offset g = dh*2 + dw (each group padded
    to rows_pad rows, ordered by pooled position i*Wp + j); columns are the
    (kh, kw, c) patch flatten padded to k_pad."""
    B, H, W, C = x_nhwc.shape
    Ho, Wo = H - K + 1, W - K + 1
    Hp, Wp = Ho // 2, Wo // 2
    # (B, Ho, Wo, K, K, C): patches[b,h,w,kh,kw,c] = x[b, h+kh, w+kw, c]
    patches = jnp.stack(
        [jnp.stack([x_nhwc[:, kh:kh + Ho, kw:kw + Wo, :] for kw in range(K)],
                   axis=-2) for kh in range(K)],
        axis=-3)
    patches = patches.reshape(B, Hp, 2, Wp, 2, K, K, C)       # h=2i+dh, w=2j+dw
    patches = jnp.transpose(patches, (0, 2, 4, 1, 3, 5, 6, 7))  # (B,dh,dw,i,j,..)
    patches = patches.reshape(B, 4, Hp * Wp, K * K * C)
    patches = jnp.pad(patches, ((0, 0), (0, 0),
                                (0, rows_pad - Hp * Wp),
                                (0, k_pad - K * K * C)))
    return patches.reshape(B, 4 * rows_pad, k_pad).astype(jnp.bfloat16)


# ---------------------------------------------------------------------------
# Parameters: PyTorch-shaped init + one-time repack into kernel layout
# ---------------------------------------------------------------------------
def init_lenet_params(key, embed_dim=84):
    """PyTorch-shaped LeNet parameters (Conv2d/Linear default-style bounds)."""
    ks = jax.random.split(key, 8)

    def u(k, shape, fan_in):
        b = 1.0 / (fan_in ** 0.5)
        return jax.random.uniform(k, shape, jnp.float32, -b, b)

    return {
        "conv1_w": u(ks[0], (6, 3, 5, 5), 3 * 5 * 5),
        "conv1_b": u(ks[1], (6,), 3 * 5 * 5),
        "conv2_w": u(ks[2], (16, 6, 5, 5), 6 * 5 * 5),
        "conv2_b": u(ks[3], (16,), 6 * 5 * 5),
        "fc1_w": u(ks[4], (120, 16 * 5 * 5), 16 * 5 * 5),
        "fc1_b": u(ks[5], (120,), 16 * 5 * 5),
        "fc2_w": u(ks[6], (embed_dim, 120), 120),
        "fc2_b": u(ks[7], (embed_dim,), 120),
    }


def _pad_to(a, shape):
    return jnp.pad(a, [(0, t - s) for s, t in zip(a.shape, shape)])


def prepare_lenet_params(p, embed_dim=84):
    """One-time repack into kernel layout: conv weights flattened to
    (kh*kw*cin, cout) matching the patch-column order, K and cout padded;
    fc1 rows permuted to the (h, w, c) feature order; MXU operands in bf16."""
    assert embed_dim <= LANE

    def bias(b):
        return _pad_to(b, (LANE,)).reshape(1, LANE).astype(jnp.float32)

    # conv1: (6,3,5,5) -> (kh,kw,cin,cout) -> (75, 6) -> (128, 128)
    w1c = jnp.transpose(p["conv1_w"], (2, 3, 1, 0)).reshape(75, 6)
    w1c = _pad_to(w1c, (128, LANE)).astype(jnp.bfloat16)
    # conv2: (16,6,5,5) -> (kh,kw,cin,cout) -> (150, 16) -> (256, 128)
    w2c = jnp.transpose(p["conv2_w"], (2, 3, 1, 0)).reshape(150, 16)
    w2c = _pad_to(w2c, (256, LANE)).astype(jnp.bfloat16)
    # fc1: PyTorch flattens (c, h, w); our feature flattens (h, w, c).
    wf1 = p["fc1_w"].reshape(120, 16, 5, 5)              # (n, c, h, w)
    wf1 = jnp.transpose(wf1, (2, 3, 1, 0)).reshape(400, 120)   # row = (h*5+w)*16+c
    wf1 = _pad_to(wf1, (512, LANE)).astype(jnp.bfloat16)
    # fc2
    wf2 = _pad_to(p["fc2_w"].T, (LANE, LANE)).astype(jnp.bfloat16)

    return {"conv1_w": w1c, "conv1_b": bias(p["conv1_b"]),
            "conv2_w": w2c, "conv2_b": bias(p["conv2_b"]),
            "fc1_w": wf1, "fc1_b": bias(p["fc1_b"]),
            "fc2_w": wf2, "fc2_b": bias(p["fc2_b"])}


# ---------------------------------------------------------------------------
# Full forward pass
# ---------------------------------------------------------------------------
def lenet_forward(params, x_nchw, *, embed_dim=84):
    B = x_nchw.shape[0]
    x = jnp.transpose(x_nchw, (0, 2, 3, 1))                          # (B,32,32,3)

    # conv1 + ReLU + pool: one (800,128)@(128,128) matmul per image.
    p1 = _im2col_pool_groups(x, K=5, rows_pad=200, k_pad=128)        # (B,800,128)
    h1 = conv_mm_relu_pool(p1, params["conv1_w"], params["conv1_b"],
                           rows=196, rows_pad=200)                   # (B,196,128)

    # conv2 + ReLU + pool: one (128,256)@(256,128) matmul per image.
    h1 = h1.reshape(B, 14, 14, LANE)[..., :6]                        # (B,14,14,6)
    p2 = _im2col_pool_groups(h1, K=5, rows_pad=32, k_pad=256)        # (B,128,256)
    h2 = conv_mm_relu_pool(p2, params["conv2_w"], params["conv2_b"],
                           rows=25, rows_pad=32)                     # (B,25,128)

    # Compact features: 25 positions x 16 real channels -> K=512 (vs 3200).
    feat = h2[:, :, :16].reshape(B, 400)                             # (h,w,c) order
    feat = jnp.pad(feat, ((0, 0), (0, 512 - 400)))                   # (B,512) bf16

    out = fc_fused(feat, params["fc1_w"], params["fc1_b"],
                   params["fc2_w"], params["fc2_b"])                 # (B,128) f32
    return out[:, :embed_dim]


if __name__ == "__main__":
    key = jax.random.PRNGKey(0)
    pkey, xkey = jax.random.split(key)

    embed_dim = 84
    params = prepare_lenet_params(init_lenet_params(pkey, embed_dim), embed_dim)
    # LeNet's fc1 (16*5*5) implies 32x32 spatial input (CIFAR-style).
    x = jax.random.normal(xkey, (2, 3, 32, 32), dtype=jnp.float32)

    fwd = jax.jit(functools.partial(lenet_forward, embed_dim=embed_dim))
    out = jax.block_until_ready(fwd(params, x))

    assert out.shape == (2, embed_dim), out.shape
    assert bool(jnp.all(jnp.isfinite(out)))
    print("KERNEL_OK")
</pallas_src>

<mosaic_0001>
module attributes {stable_mosaic.version = 11 : i64} {
  func.func @_conv_mm_relu_pool_kernel(%arg0: i32, %arg1: memref<1x800x128xbf16, #tpu.memory_space<vmem>>, %arg2: memref<128x128xbf16, #tpu.memory_space<vmem>>, %arg3: memref<1x128xf32, #tpu.memory_space<vmem>>, %arg4: memref<1x196x128xbf16, #tpu.memory_space<vmem>>) attributes {dimension_semantics = [#tpu.dimension_semantics<parallel>], iteration_bounds = array<i64: 2>, scalar_prefetch = 0 : i64, scratch_operands = 0 : i64, tpu.core_type = #tpu.core_type<tc>, window_params = [{transform_indices = @transform_0, window_bounds = array<i64: 1, 800, 128>}, {pipeline_mode = #tpu.pipeline_mode<synchronous>, transform_indices = @transform_1, window_bounds = array<i64: 128, 128>}, {pipeline_mode = #tpu.pipeline_mode<synchronous>, transform_indices = @transform_2, window_bounds = array<i64: 1, 128>}, {transform_indices = @transform_3, window_bounds = array<i64: 1, 196, 128>}]} {
    %c0 = arith.constant 0 : index
    %c0_0 = arith.constant 0 : index
    %c0_1 = arith.constant 0 : index
    %0 = vector.load %arg1[%c0, %c0_0, %c0_1] : memref<1x800x128xbf16, #tpu.memory_space<vmem>>, vector<1x800x128xbf16>
    %1 = vector.shape_cast %0 : vector<1x800x128xbf16> to vector<800x128xbf16>
    %c0_2 = arith.constant 0 : index
    %c0_3 = arith.constant 0 : index
    %2 = vector.load %arg2[%c0_2, %c0_3] : memref<128x128xbf16, #tpu.memory_space<vmem>>, vector<128x128xbf16>
    %cst = arith.constant dense<0.000000e+00> : vector<800x128xf32>
    %3 = tpu.matmul %1, %2, %cst {dimension_numbers = #tpu.dot_dimension_numbers<[1], [0], [0], [1], [0, 0, 1, 1], [], []>} : vector<800x128xbf16>, vector<128x128xbf16>, vector<800x128xf32> -> vector<800x128xf32>
    %c0_4 = arith.constant 0 : index
    %c0_5 = arith.constant 0 : index
    %4 = vector.load %arg3[%c0_4, %c0_5] : memref<1x128xf32, #tpu.memory_space<vmem>>, vector<1x128xf32>
    %5 = vector.broadcast %4 : vector<1x128xf32> to vector<800x128xf32>
    %6 = arith.addf %3, %5 : vector<800x128xf32>
    %cst_6 = arith.constant 0.000000e+00 : f32
    %7 = vector.broadcast %cst_6 : f32 to vector<800x128xf32>
    %8 = arith.maximumf %6, %7 : vector<800x128xf32>
    %9 = vector.extract_strided_slice %8 {offsets = [0, 0], sizes = [196, 128], strides = [1, 1]} : vector<800x128xf32> to vector<196x128xf32>
    %10 = vector.extract_strided_slice %8 {offsets = [200, 0], sizes = [196, 128], strides = [1, 1]} : vector<800x128xf32> to vector<196x128xf32>
    %11 = arith.maximumf %9, %10 : vector<196x128xf32>
    %12 = vector.extract_strided_slice %8 {offsets = [400, 0], sizes = [196, 128], strides = [1, 1]} : vector<800x128xf32> to vector<196x128xf32>
    %13 = vector.extract_strided_slice %8 {offsets = [600, 0], sizes = [196, 128], strides = [1, 1]} : vector<800x128xf32> to vector<196x128xf32>
    %14 = arith.maximumf %12, %13 : vector<196x128xf32>
    %15 = arith.maximumf %11, %14 : vector<196x128xf32>
    %16 = arith.truncf %15 : vector<196x128xf32> to vector<196x128xbf16>
    %c0_7 = arith.constant 0 : index
    %c0_8 = arith.constant 0 : index
    %c0_9 = arith.constant 0 : index
    %17 = vector.load %arg4[%c0_7, %c0_8, %c0_9] : memref<1x196x128xbf16, #tpu.memory_space<vmem>>, vector<1x196x128xbf16>
    %18 = vector.shape_cast %17 : vector<1x196x128xbf16> to vector<196x128xbf16>
    %19 = vector.shape_cast %16 : vector<196x128xbf16> to vector<1x196x128xbf16>
    tpu.vector_store %arg4[%c0_7, %c0_8, %c0_9], %19 {strides = array<i32>} : memref<1x196x128xbf16, #tpu.memory_space<vmem>>, vector<1x196x128xbf16>,
    return
  }
  func.func @transform_0(%arg0: i32) -> (i32, i32, i32) {
    %c0_i32 = arith.constant 0 : i32
    %c0_i32_0 = arith.constant 0 : i32
    %c0_i32_1 = arith.constant 0 : i32
    return %arg0, %c0_i32, %c0_i32_0 : i32, i32, i32
  }
  func.func @transform_1(%arg0: i32) -> (i32, i32) {
    %c0_i32 = arith.constant 0 : i32
    %c0_i32_0 = arith.constant 0 : i32
    %c0_i32_1 = arith.constant 0 : i32
    return %c0_i32, %c0_i32_0 : i32, i32
  }
  func.func @transform_2(%arg0: i32) -> (i32, i32) {
    %c0_i32 = arith.constant 0 : i32
    %c0_i32_0 = arith.constant 0 : i32
    %c0_i32_1 = arith.constant 0 : i32
    return %c0_i32, %c0_i32_0 : i32, i32
  }
  func.func @transform_3(%arg0: i32) -> (i32, i32, i32) {
    %c0_i32 = arith.constant 0 : i32
    %c0_i32_0 = arith.constant 0 : i32
    %c0_i32_1 = arith.constant 0 : i32
    return %arg0, %c0_i32, %c0_i32_0 : i32, i32, i32
  }
}

module attributes {stable_mosaic.version = 11 : i64} {
  func.func @_conv_mm_relu_pool_kernel(%arg0: i32, %arg1: memref<1x128x256xbf16, #tpu.memory_space<vmem>>, %arg2: memref<256x128xbf16, #tpu.memory_space<vmem>>, %arg3: memref<1x128xf32, #tpu.memory_space<vmem>>, %arg4: memref<1x25x128xbf16, #tpu.memory_space<vmem>>) attributes {dimension_semantics = [#tpu.dimension_semantics<parallel>], iteration_bounds = array<i64: 2>, scalar_prefetch = 0 : i64, scratch_operands = 0 : i64, tpu.core_type = #tpu.core_type<tc>, window_params = [{transform_indices = @transform_0, window_bounds = array<i64: 1, 128, 256>}, {pipeline_mode = #tpu.pipeline_mode<synchronous>, transform_indices = @transform_1, window_bounds = array<i64: 256, 128>}, {pipeline_mode = #tpu.pipeline_mode<synchronous>, transform_indices = @transform_2, window_bounds = array<i64: 1, 128>}, {transform_indices = @transform_3, window_bounds = array<i64: 1, 25, 128>}]} {
    %c0 = arith.constant 0 : index
    %c0_0 = arith.constant 0 : index
    %c0_1 = arith.constant 0 : index
    %0 = vector.load %arg1[%c0, %c0_0, %c0_1] : memref<1x128x256xbf16, #tpu.memory_space<vmem>>, vector<1x128x256xbf16>
    %1 = vector.shape_cast %0 : vector<1x128x256xbf16> to vector<128x256xbf16>
    %c0_2 = arith.constant 0 : index
    %c0_3 = arith.constant 0 : index
    %2 = vector.load %arg2[%c0_2, %c0_3] : memref<256x128xbf16, #tpu.memory_space<vmem>>, vector<256x128xbf16>
    %cst = arith.constant dense<0.000000e+00> : vector<128x128xf32>
    %3 = tpu.matmul %1, %2, %cst {dimension_numbers = #tpu.dot_dimension_numbers<[1], [0], [0], [1], [0, 0, 1, 1], [], []>} : vector<128x256xbf16>, vector<256x128xbf16>, vector<128x128xf32> -> vector<128x128xf32>
    %c0_4 = arith.constant 0 : index
    %c0_5 = arith.constant 0 : index
    %4 = vector.load %arg3[%c0_4, %c0_5] : memref<1x128xf32, #tpu.memory_space<vmem>>, vector<1x128xf32>
    %5 = vector.broadcast %4 : vector<1x128xf32> to vector<128x128xf32>
    %6 = arith.addf %3, %5 : vector<128x128xf32>
    %cst_6 = arith.constant 0.000000e+00 : f32
    %7 = vector.broadcast %cst_6 : f32 to vector<128x128xf32>
    %8 = arith.maximumf %6, %7 : vector<128x128xf32>
    %9 = vector.extract_strided_slice %8 {offsets = [0, 0], sizes = [25, 128], strides = [1, 1]} : vector<128x128xf32> to vector<25x128xf32>
    %10 = vector.extract_strided_slice %8 {offsets = [32, 0], sizes = [25, 128], strides = [1, 1]} : vector<128x128xf32> to vector<25x128xf32>
    %11 = arith.maximumf %9, %10 : vector<25x128xf32>
    %12 = vector.extract_strided_slice %8 {offsets = [64, 0], sizes = [25, 128], strides = [1, 1]} : vector<128x128xf32> to vector<25x128xf32>
    %13 = vector.extract_strided_slice %8 {offsets = [96, 0], sizes = [25, 128], strides = [1, 1]} : vector<128x128xf32> to vector<25x128xf32>
    %14 = arith.maximumf %12, %13 : vector<25x128xf32>
    %15 = arith.maximumf %11, %14 : vector<25x128xf32>
    %16 = arith.truncf %15 : vector<25x128xf32> to vector<25x128xbf16>
    %c0_7 = arith.constant 0 : index
    %c0_8 = arith.constant 0 : index
    %c0_9 = arith.constant 0 : index
    %17 = vector.load %arg4[%c0_7, %c0_8, %c0_9] : memref<1x25x128xbf16, #tpu.memory_space<vmem>>, vector<1x25x128xbf16>
    %18 = vector.shape_cast %17 : vector<1x25x128xbf16> to vector<25x128xbf16>
    %19 = vector.shape_cast %16 : vector<25x128xbf16> to vector<1x25x128xbf16>
    tpu.vector_store %arg4[%c0_7, %c0_8, %c0_9], %19 {strides = array<i32>} : memref<1x25x128xbf16, #tpu.memory_space<vmem>>, vector<1x25x128xbf16>,
    return
  }
  func.func @transform_0(%arg0: i32) -> (i32, i32, i32) {
    %c0_i32 = arith.constant 0 : i32
    %c0_i32_0 = arith.constant 0 : i32
    %c0_i32_1 = arith.constant 0 : i32
    return %arg0, %c0_i32, %c0_i32_0 : i32, i32, i32
  }
  func.func @transform_1(%arg0: i32) -> (i32, i32) {
    %c0_i32 = arith.constant 0 : i32
    %c0_i32_0 = arith.constant 0 : i32
    %c0_i32_1 = arith.constant 0 : i32
    return %c0_i32, %c0_i32_0 : i32, i32
  }
  func.func @transform_2(%arg0: i32) -> (i32, i32) {
    %c0_i32 = arith.constant 0 : i32
    %c0_i32_0 = arith.constant 0 : i32
    %c0_i32_1 = arith.constant 0 : i32
    return %c0_i32, %c0_i32_0 : i32, i32
  }
  func.func @transform_3(%arg0: i32) -> (i32, i32, i32) {
    %c0_i32 = arith.constant 0 : i32
    %c0_i32_0 = arith.constant 0 : i32
    %c0_i32_1 = arith.constant 0 : i32
    return %arg0, %c0_i32, %c0_i32_0 : i32, i32, i32
  }
}

module attributes {stable_mosaic.version = 11 : i64} {
  func.func @_fc_fused_kernel(%arg0: i32, %arg1: memref<2x512xbf16, #tpu.memory_space<vmem>>, %arg2: memref<512x128xbf16, #tpu.memory_space<vmem>>, %arg3: memref<1x128xf32, #tpu.memory_space<vmem>>, %arg4: memref<128x128xbf16, #tpu.memory_space<vmem>>, %arg5: memref<1x128xf32, #tpu.memory_space<vmem>>, %arg6: memref<2x128xf32, #tpu.memory_space<vmem>>) attributes {dimension_semantics = [#tpu.dimension_semantics<parallel>], iteration_bounds = array<i64: 1>, scalar_prefetch = 0 : i64, scratch_operands = 0 : i64, tpu.core_type = #tpu.core_type<tc>, window_params = [{transform_indices = @transform_0, window_bounds = array<i64: 2, 512>}, {pipeline_mode = #tpu.pipeline_mode<synchronous>, transform_indices = @transform_1, window_bounds = array<i64: 512, 128>}, {pipeline_mode = #tpu.pipeline_mode<synchronous>, transform_indices = @transform_2, window_bounds = array<i64: 1, 128>}, {pipeline_mode = #tpu.pipeline_mode<synchronous>, transform_indices = @transform_3, window_bounds = array<i64: 128, 128>}, {pipeline_mode = #tpu.pipeline_mode<synchronous>, transform_indices = @transform_4, window_bounds = array<i64: 1, 128>}, {transform_indices = @transform_5, window_bounds = array<i64: 2, 128>}]} {
    %c0 = arith.constant 0 : index
    %c0_0 = arith.constant 0 : index
    %0 = vector.load %arg1[%c0, %c0_0] : memref<2x512xbf16, #tpu.memory_space<vmem>>, vector<2x512xbf16>
    %c0_1 = arith.constant 0 : index
    %c0_2 = arith.constant 0 : index
    %1 = vector.load %arg2[%c0_1, %c0_2] : memref<512x128xbf16, #tpu.memory_space<vmem>>, vector<512x128xbf16>
    %cst = arith.constant dense<0.000000e+00> : vector<2x128xf32>
    %2 = tpu.matmul %0, %1, %cst {dimension_numbers = #tpu.dot_dimension_numbers<[1], [0], [0], [1], [0, 0, 1, 1], [], []>} : vector<2x512xbf16>, vector<512x128xbf16>, vector<2x128xf32> -> vector<2x128xf32>
    %c0_3 = arith.constant 0 : index
    %c0_4 = arith.constant 0 : index
    %3 = vector.load %arg3[%c0_3, %c0_4] : memref<1x128xf32, #tpu.memory_space<vmem>>, vector<1x128xf32>
    %4 = vector.broadcast %3 : vector<1x128xf32> to vector<2x128xf32>
    %5 = arith.addf %2, %4 : vector<2x128xf32>
    %cst_5 = arith.constant 0.000000e+00 : f32
    %6 = vector.broadcast %cst_5 : f32 to vector<2x128xf32>
    %7 = arith.maximumf %5, %6 : vector<2x128xf32>
    %8 = arith.truncf %7 : vector<2x128xf32> to vector<2x128xbf16>
    %c0_6 = arith.constant 0 : index
    %c0_7 = arith.constant 0 : index
    %9 = vector.load %arg4[%c0_6, %c0_7] : memref<128x128xbf16, #tpu.memory_space<vmem>>, vector<128x128xbf16>
    %cst_8 = arith.constant dense<0.000000e+00> : vector<2x128xf32>
    %10 = tpu.matmul %8, %9, %cst_8 {dimension_numbers = #tpu.dot_dimension_numbers<[1], [0], [0], [1], [0, 0, 1, 1], [], []>} : vector<2x128xbf16>, vector<128x128xbf16>, vector<2x128xf32> -> vector<2x128xf32>
    %c0_9 = arith.constant 0 : index
    %c0_10 = arith.constant 0 : index
    %11 = vector.load %arg5[%c0_9, %c0_10] : memref<1x128xf32, #tpu.memory_space<vmem>>, vector<1x128xf32>
    %12 = vector.broadcast %11 : vector<1x128xf32> to vector<2x128xf32>
    %13 = arith.addf %10, %12 : vector<2x128xf32>
    %c0_11 = arith.constant 0 : index
    %c0_12 = arith.constant 0 : index
    %14 = vector.load %arg6[%c0_11, %c0_12] : memref<2x128xf32, #tpu.memory_space<vmem>>, vector<2x128xf32>
    tpu.vector_store %arg6[%c0_11, %c0_12], %13 {strides = array<i32>} : memref<2x128xf32, #tpu.memory_space<vmem>>, vector<2x128xf32>,
    return
  }
  func.func @transform_0(%arg0: i32) -> (i32, i32) {
    %c0_i32 = arith.constant 0 : i32
    %c0_i32_0 = arith.constant 0 : i32
    return %arg0, %c0_i32 : i32, i32
  }
  func.func @transform_1(%arg0: i32) -> (i32, i32) {
    %c0_i32 = arith.constant 0 : i32
    %c0_i32_0 = arith.constant 0 : i32
    %c0_i32_1 = arith.constant 0 : i32
    return %c0_i32, %c0_i32_0 : i32, i32
  }
  func.func @transform_2(%arg0: i32) -> (i32, i32) {
    %c0_i32 = arith.constant 0 : i32
    %c0_i32_0 = arith.constant 0 : i32
    %c0_i32_1 = arith.constant 0 : i32
    return %c0_i32, %c0_i32_0 : i32, i32
  }
  func.func @transform_3(%arg0: i32) -> (i32, i32) {
    %c0_i32 = arith.constant 0 : i32
    %c0_i32_0 = arith.constant 0 : i32
    %c0_i32_1 = arith.constant 0 : i32
    return %c0_i32, %c0_i32_0 : i32, i32
  }
  func.func @transform_4(%arg0: i32) -> (i32, i32) {
    %c0_i32 = arith.constant 0 : i32
    %c0_i32_0 = arith.constant 0 : i32
    %c0_i32_1 = arith.constant 0 : i32
    return %c0_i32, %c0_i32_0 : i32, i32
  }
  func.func @transform_5(%arg0: i32) -> (i32, i32) {
    %c0_i32 = arith.constant 0 : i32
    %c0_i32_0 = arith.constant 0 : i32
    return %arg0, %c0_i32 : i32, i32
  }
}

</mosaic_0001>

<bundles_post_ra>
// kernel: lenet_forward.3
= control target key start
LH: loop header
LB: loop body
LE: loop exit
PB: predicated region body
PF: predicated region fallthrough
CT: control target
= control target key end

     0   :  { %s1907_s12 = smov 0   ;;  %s2466_s0 = inlined_call_operand.vmem [shape: bf16[2,800,128], index: 0, kind: input, shape index: {}]   ;;  %s2467_s1 = inlined_call_operand.vmem [shape: bf16[128,128], index: 1, kind: input, shape index: {}]   ;;  %s2468_s2 = inlined_call_operand.vmem [shape: f32[1,128], index: 2, kind: input, shape index: {}]   ;;  %s2469_s3 = inlined_call_operand.vmem [shape: bf16[2,196,128], index: 3, kind: output, shape index: {}]  }
   0x1 LB: > { %s1432_s13 = sadd.s32 4294967295, %s1885_s12   ;;  %p1436_p0 = scmp.ge.s32.totalorder %s1885_s12, 1  ;;  %s1885_s12 = sphi %s1907_s12, %s13_s12  }
   0x2   : > { %p137_p1 = scmp.lt.s32.totalorder %s1885_s12, 3 }
   0x4   : > { %p138_p2 = pnand %p1436_p0, %p137_p1 }
   0x6   : > { %141 = sbr.rel (%p138_p2) target bundleno = 377 (0x179), region = 32 }
   0xd   : > { %v1821_v0 = vld [vmem:[%s2467_s1] sm:$0xff]   ;;  %p161_p3 = scmp.lt.s32.totalorder %s1432_s13, 1  ;;  %v1822_v1 = vld [vmem:[%s2467_s1 + $0x8] sm:$0xff]   ;;  %v1823_v2 = vld [vmem:[%s2467_s1 + $0x10] sm:$0xff]  }
   0xe   : > { %1679 = vmatprep.subr.bf16.mxu0 %v1821_v0  ;;  %1795 = vmatprep.subr.bf16.mxu1 %v1821_v0  ;;  %v1824_v3 = vld [vmem:[%s2467_s1 + $0x18] sm:$0xff]   ;;  %v1825_v6 = vld [vmem:[%s2467_s1 + $0x20] sm:$0xff]   ;;  %v1826_v7 = vld [vmem:[%s2467_s1 + $0x28] sm:$0xff]  }
   0xf   : > { %s2528_s13 = smov (!%p161_p3, %s1432_s13), 1  ;;  %1680 = vmatpush3.bf16.msra.mxu0 %v1821_v0  ;;  %1803 = vmatpush3.bf16.msra.mxu1 %v1821_v0  ;;  %v1827_v8 = vld [vmem:[%s2467_s1 + $0x30] sm:$0xff]   ;;  %v1828_v9 = vld [vmem:[%s2467_s1 + $0x38] sm:$0xff]  }
  0x10   : > { %1681 = vmatprep.subr.bf16.mxu0 %v1822_v1  ;;  %1796 = vmatprep.subr.bf16.mxu1 %v1822_v1  ;;  %s1811_s20 = smul.u32 400, %s2528_s13 }
  0x11   : > { %s1812_s9 = smul.u32 100, %s2528_s13 }
  0x12   : > { %s1930_s23 = scalar_lea.vmem %s2466_s0, %s1811_s20 }
  0x13   : > { %1682 = vmatpush3.bf16.msra.mxu0 %v1822_v1  ;;  %1804 = vmatpush3.bf16.msra.mxu1 %v1822_v1  ;;  %v1829_v4 = vld [vmem:[%s1930_s23] sm:$0xff]   ;;  %v1830_v5 = vld [vmem:[%s1930_s23 + $0xd0] sm:$0xff]   ;;  %v1831_v10 = vld [vmem:[%s1930_s23 + $0x8] sm:$0xff]   ;;  %s2305_s13 = scalar_lea.vmem %s2469_s3, %s1812_s9 }
  0x14   : > { %1683 = vmatprep.subr.bf16.mxu0 %v1823_v2  ;;  %1797 = vmatprep.subr.bf16.mxu1 %v1823_v2  ;;  %v1832_v11 = vld [vmem:[%s1930_s23 + $0xd8] sm:$0xff]   ;;  %v1833_v12 = vld [vmem:[%s1930_s23 + $0x10] sm:$0xff]   ;;  %v1834_v13 = vld [vmem:[%s1930_s23 + $0xe0] sm:$0xff]  }
  0x15   : > { %1695 = vmatprep.mubr.bf16.mxu0 %v1829_v4  ;;  %1747 = vmatprep.mubr.bf16.mxu1 %v1830_v5  ;;  %v1835_v14 = vld [vmem:[%s1930_s23 + $0x18] sm:$0xff]   ;;  %v1836_v15 = vld [vmem:[%s1930_s23 + $0xe8] sm:$0xff]   ;;  %v1837_v16 = vld [vmem:[%s1930_s23 + $0x20] sm:$0xff]  }
  0x16   : > { %v1838_v17 = vld [vmem:[%s1930_s23 + $0xf0] sm:$0xff]   ;;  %v1839_v18 = vld [vmem:[%s1930_s23 + $0x28] sm:$0xff]   ;;  %v1840_v19 = vld [vmem:[%s1930_s23 + $0xf8] sm:$0xff]  }
  0x17   : > { %1684 = vmatpush3.bf16.msra.mxu0 %v1823_v2  ;;  %1805 = vmatpush3.bf16.msra.mxu1 %v1823_v2  ;;  %v1841_v20 = vld [vmem:[%s1930_s23 + $0x30] sm:$0xff]   ;;  %v1842_v21 = vld [vmem:[%s1930_s23 + $0x100] sm:$0xff]   ;;  %v1843_v22 = vld [vmem:[%s1930_s23 + $0x38] sm:$0xff]  }
  0x18   : > { %1685 = vmatprep.subr.bf16.mxu0 %v1824_v3  ;;  %1798 = vmatprep.subr.bf16.mxu1 %v1824_v3  ;;  %v1844_v23 = vld [vmem:[%s1930_s23 + $0x108] sm:$0xff]   ;;  %v1845_v24 = vld [vmem:[%s1930_s23 + $0x40] sm:$0xff]   ;;  %v1846_v25 = vld [vmem:[%s1930_s23 + $0x110] sm:$0xff]  }
  0x19   : > { %v1847_v26 = vld [vmem:[%s1930_s23 + $0x48] sm:$0xff]   ;;  %v1848_v27 = vld [vmem:[%s1930_s23 + $0x118] sm:$0xff]   ;;  %v1849_v28 = vld [vmem:[%s1930_s23 + $0x50] sm:$0xff]  }
  0x1a   : > { %v1850_v29 = vld [vmem:[%s1930_s23 + $0x120] sm:$0xff]   ;;  %v1851_v30 = vld [vmem:[%s1930_s23 + $0x58] sm:$0xff]   ;;  %v1852_v31 = vld [vmem:[%s1930_s23 + $0x128] sm:$0xff]  }
  0x1b   : > { %1686 = vmatpush3.bf16.msra.mxu0 %v1824_v3  ;;  %1806 = vmatpush3.bf16.msra.mxu1 %v1824_v3  ;;  %v1853_v32 = vld [vmem:[%s1930_s23 + $0x60] sm:$0xff]   ;;  %v1854_v33 = vld [vmem:[%s1930_s23 + $0x130] sm:$0xff]   ;;  %v1855_v34 = vld [vmem:[%s1930_s23 + $0x68] sm:$0xff]  }
  0x1c   : > { %1687 = vmatprep.subr.bf16.mxu0 %v1825_v6  ;;  %1799 = vmatprep.subr.bf16.mxu1 %v1825_v6  ;;  %v1856_v35 = vld [vmem:[%s1930_s23 + $0x138] sm:$0xff]   ;;  %v1857_v36 = vld [vmem:[%s1930_s23 + $0x70] sm:$0xff]   ;;  %v1858_v37 = vld [vmem:[%s1930_s23 + $0x140] sm:$0xff]  }
  0x1d   : > { %v1859_v38 = vld [vmem:[%s1930_s23 + $0x78] sm:$0xff]   ;;  %v1860_v39 = vld [vmem:[%s1930_s23 + $0x148] sm:$0xff]   ;;  %v1861_v40 = vld [vmem:[%s1930_s23 + $0x80] sm:$0xff]  }
  0x1e   : > { %v1862_v41 = vld [vmem:[%s1930_s23 + $0x150] sm:$0xff]   ;;  %v1863_v42 = vld [vmem:[%s1930_s23 + $0x88] sm:$0xff]   ;;  %v1864_v43 = vld [vmem:[%s1930_s23 + $0x158] sm:$0xff]  }
  0x1f   : > { %1688 = vmatpush3.bf16.msra.mxu0 %v1825_v6  ;;  %1807 = vmatpush3.bf16.msra.mxu1 %v1825_v6  ;;  %v1865_v44 = vld [vmem:[%s1930_s23 + $0x90] sm:$0xff]   ;;  %v1866_v45 = vld [vmem:[%s1930_s23 + $0x160] sm:$0xff]   ;;  %v1867_v46 = vld [vmem:[%s1930_s23 + $0x98] sm:$0xff]  }
  0x20   : > { %1689 = vmatprep.subr.bf16.mxu0 %v1826_v7  ;;  %1800 = vmatprep.subr.bf16.mxu1 %v1826_v7  ;;  %v1868_v47 = vld [vmem:[%s1930_s23 + $0x168] sm:$0xff]   ;;  %v1869_v48 = vld [vmem:[%s1930_s23 + $0xa0] sm:$0xff]   ;;  %v1870_v49 = vld [vmem:[%s1930_s23 + $0x170] sm:$0xff]  }
  0x21   : > { %v1871_v50 = vld [vmem:[%s1930_s23 + $0xa8] sm:$0xff]   ;;  %v1872_v51 = vld [vmem:[%s1930_s23 + $0x178] sm:$0xff]   ;;  %v1873_v52 = vld [vmem:[%s1930_s23 + $0xb0] sm:$0xff]  }
  0x22   : > { %v1874_v53 = vld [vmem:[%s1930_s23 + $0x180] sm:$0xff]   ;;  %v1875_v54 = vld [vmem:[%s1930_s23 + $0xb8] sm:$0xff]   ;;  %v1876_v55 = vld [vmem:[%s1930_s23 + $0x188] sm:$0xff]  }
  0x23   : > { %1690 = vmatpush3.bf16.msra.mxu0 %v1826_v7  ;;  %1808 = vmatpush3.bf16.msra.mxu1 %v1826_v7  ;;  %v1877_v56 = vld [vmem:[%s1930_s23 + $0xc0] sm:$0xff]   ;;  %v1878_v57 = vld [vmem:[%s1930_s23 + $0xc8] sm:$0xff]  }
  0x24   : > { %1691 = vmatprep.subr.bf16.mxu0 %v1827_v8  ;;  %1801 = vmatprep.subr.bf16.mxu1 %v1827_v8 }
  0x27   : > { %1692 = vmatpush3.bf16.msra.mxu0 %v1827_v8  ;;  %1809 = vmatpush3.bf16.msra.mxu1 %v1827_v8 }
  0x28   : > { %1693 = vmatprep.subr.bf16.mxu0 %v1828_v9  ;;  %1802 = vmatprep.subr.bf16.mxu1 %v1828_v9 }
  0x2b   : > { %1694 = vmatpush3.bf16.msra.mxu0 %v1828_v9  ;;  %1810 = vmatpush3.bf16.msra.mxu1 %v1828_v9 }
  0x2e   : > { %1696 = vmatmul.mubr.bf16.vlgmr.msra.gmra.mrb[0].mxu0 %v1831_v10  ;;  %1748 = vmatmul.mubr.bf16.vlgmr.msra.gmra.mrb[0].mxu1 %v1832_v11 }
  0x2f   : > { %1699 = vmatprep.mubr.bf16.mxu0 %v1833_v12  ;;  %1751 = vmatprep.mubr.bf16.mxu1 %v1834_v13 }
  0x36   : > { %1700 = vmatmul.mubr.bf16.gmra.mrb[4].mxu0 %v1835_v14  ;;  %1752 = vmatmul.mubr.bf16.gmra.mrb[4].mxu1 %v1836_v15 }
  0x37   : > { %1703 = vmatprep.mubr.bf16.mxu0 %v1837_v16  ;;  %1755 = vmatprep.mubr.bf16.mxu1 %v1838_v17 }
  0x3e   : > { %1704 = vmatmul.mubr.bf16.gmra.mrb[8].mxu0 %v1839_v18  ;;  %1756 = vmatmul.mubr.bf16.gmra.mrb[8].mxu1 %v1840_v19 }
  0x3f   : > { %1707 = vmatprep.mubr.bf16.mxu0 %v1841_v20  ;;  %1759 = vmatprep.mubr.bf16.mxu1 %v1842_v21 }
  0x46   : > { %1708 = vmatmul.mubr.bf16.gmra.mrb[12].mxu0 %v1843_v22  ;;  %1760 = vmatmul.mubr.bf16.gmra.mrb[12].mxu1 %v1844_v23 }
  0x47   : > { %1711 = vmatprep.mubr.bf16.mxu0 %v1845_v24  ;;  %1763 = vmatprep.mubr.bf16.mxu1 %v1846_v25 }
  0x4e   : > { %1712 = vmatmul.mubr.bf16.gmra.mrb[16].mxu0 %v1847_v26  ;;  %1764 = vmatmul.mubr.bf16.gmra.mrb[16].mxu1 %v1848_v27  ;;  %v2016_v26 = vld [vmem:[%s2468_s2] ss:$0 sm:$0xff] }
  0x4f   : > { %1715 = vmatprep.mubr.bf16.mxu0 %v1849_v28  ;;  %1767 = vmatprep.mubr.bf16.mxu1 %v1850_v29 }
  0x56   : > { %1716 = vmatmul.mubr.bf16.gmra.mrb[20].mxu0 %v1851_v30  ;;  %1768 = vmatmul.mubr.bf16.gmra.mrb[20].mxu1 %v1852_v31 }
  0x57   : > { %1719 = vmatprep.mubr.bf16.mxu0 %v1853_v32  ;;  %1771 = vmatprep.mubr.bf16.mxu1 %v1854_v33 }
  0x5e   : > { %1720 = vmatmul.mubr.bf16.gmra.mrb[24].mxu0 %v1855_v34  ;;  %1772 = vmatmul.mubr.bf16.gmra.mrb[24].mxu1 %v1856_v35 }
  0x5f   : > { %1723 = vmatprep.mubr.bf16.mxu0 %v1857_v36  ;;  %1775 = vmatprep.mubr.bf16.mxu1 %v1858_v37 }
  0x66   : > { %1724 = vmatmul.mubr.bf16.gmra.mrb[28].mxu0 %v1859_v38  ;;  %1776 = vmatmul.mubr.bf16.gmra.mrb[28].mxu1 %v1860_v39 }
  0x67   : > { %1727 = vmatprep.mubr.bf16.mxu0 %v1861_v40  ;;  %1779 = vmatprep.mubr.bf16.mxu1 %v1862_v41 }
  0x6e   : > { %1728 = vmatmul.mubr.bf16.gmra.mrb[32].mxu0 %v1863_v42  ;;  %1780 = vmatmul.mubr.bf16.gmra.mrb[32].mxu1 %v1864_v43 }
  0x6f   : > { %1731 = vmatprep.mubr.bf16.mxu0 %v1865_v44  ;;  %1783 = vmatprep.mubr.bf16.mxu1 %v1866_v45 }
  0x76   : > { %1732 = vmatmul.mubr.bf16.gmra.mrb[36].mxu0 %v1867_v46  ;;  %1784 = vmatmul.mubr.bf16.gmra.mrb[36].mxu1 %v1868_v47 }
  0x77   : > { %1735 = vmatprep.mubr.bf16.mxu0 %v1869_v48  ;;  %1787 = vmatprep.mubr.bf16.mxu1 %v1870_v49 }
  0x7e   : > { %1736 = vmatmul.mubr.bf16.gmra.mrb[40].mxu0 %v1871_v50  ;;  %1788 = vmatmul.mubr.bf16.gmra.mrb[40].mxu1 %v1872_v51 }
  0x7f   : > { %1739 = vmatprep.mubr.bf16.mxu0 %v1873_v52  ;;  %1791 = vmatprep.mubr.bf16.mxu1 %v1874_v53 }
  0x86   : > { %1740 = vmatmul.mubr.bf16.gmra.mrb[44].mxu0 %v1875_v54  ;;  %1792 = vmatmul.mubr.bf16.gmra.mrb[44].mxu1 %v1876_v55 }
  0x87   : > { %1743 = vmatprep.mubr.bf16.mxu0 %v1877_v56 }
  0x8e   : > { %1744 = vmatmul.mubr.bf16.gmra.mrb[48].mxu0 %v1878_v57 }
 0x101   : > { %v1697_v58 = vpop.f32.mrb[0].mxu0  ;;  %v1749_v59 = vpop.f32.mrb[0].mxu1 }
 0x102   : > { %v677_v60 = vpop.f32.mrb[1].mxu0  ;;  %v885_v61 = vpop.f32.mrb[1].mxu1  ;;  %v2023_v29 = vadd.f32 %v1697_v58, %v2016_v26  ;;  %v2029_v31 = vadd.f32 %v1749_v59, %v2016_v26 }
 0x103   : > { %v1698_v62 = vpop.f32.mrb[2].mxu0  ;;  %v1750_v63 = vpop.f32.mrb[2].mxu1  ;;  %v2026_v30 = vadd.f32 %v2016_v26, %v677_v60  ;;  %v2042_v36 = vadd.f32 %v2016_v26, %v885_v61 }
 0x104   : > { %v680_v0 = vpop.f32.mrb[3].mxu0  ;;  %v888_v1 = vpop.f32.mrb[3].mxu1  ;;  %v2036_v34 = vadd.f32 %v1698_v62, %v2016_v26  ;;  %v2045_v37 = vadd.f32 %v1750_v63, %v2016_v26 }
 0x105   : > { %v2039_v35 = vadd.f32 %v2016_v26, %v680_v0  ;;  %v2055_v41 = vadd.f32 %v2016_v26, %v888_v1 }
 0x109   : > { %v1701_v2 = vpop.f32.mrb[4].mxu0  ;;  %v1753_v3 = vpop.f32.mrb[4].mxu1 }
 0x10a   : > { %v693_v4 = vpop.f32.mrb[5].mxu0  ;;  %v901_v5 = vpop.f32.mrb[5].mxu1  ;;  %v2052_v40 = vadd.f32 %v1701_v2, %v2016_v26  ;;  %v2061_v43 = vadd.f32 %v1753_v3, %v2016_v26 }
 0x10b   : > { %v1702_v6 = vpop.f32.mrb[6].mxu0  ;;  %v1754_v7 = vpop.f32.mrb[6].mxu1  ;;  %v2058_v42 = vadd.f32 %v2016_v26, %v693_v4  ;;  %v2074_v48 = vadd.f32 %v2016_v26, %v901_v5 }
 0x10c   : > { %v696_v8 = vpop.f32.mrb[7].mxu0  ;;  %v904_v9 = vpop.f32.mrb[7].mxu1  ;;  %v2068_v46 = vadd.f32 %v1702_v6, %v2016_v26  ;;  %v2077_v49 = vadd.f32 %v1754_v7, %v2016_v26 }
 0x10d   : > { %v2071_v47 = vadd.f32 %v2016_v26, %v696_v8  ;;  %v2083_v53 = vadd.f32 %v2016_v26, %v904_v9 }
 0x111   : > { %v1705_v10 = vpop.f32.mrb[8].mxu0  ;;  %v1757_v11 = vpop.f32.mrb[8].mxu1 }
 0x112   : > { %v709_v12 = vpop.f32.mrb[9].mxu0  ;;  %v1997_v13 = vpop.f32.mrb[9].mxu1  ;;  %v2102_v4 = vadd.f32 %v1705_v10, %v2016_v26  ;;  %v2109_v7 = vadd.f32 %v1757_v11, %v2016_v26 }
 0x113   : > { %v1706_v14 = vpop.f32.mrb[10].mxu0  ;;  %v1758_v15 = vpop.f32.mrb[10].mxu1  ;;  %v2106_v6 = vadd.f32 %v2016_v26, %v709_v12  ;;  %v2123_v10 = vadd.f32 %v2016_v26, %v1997_v13 }
 0x114   : > { %v712_v16 = vpop.f32.mrb[11].mxu0  ;;  %v1999_v17 = vpop.f32.mrb[11].mxu1  ;;  %v2116_v1 = vadd.f32 %v1706_v14, %v2016_v26  ;;  %v2126_v12 = vadd.f32 %v1758_v15, %v2016_v26 }
 0x115   : > { %v2119_v62 = vadd.f32 %v2016_v26, %v712_v16  ;;  %v2137_v14 = vadd.f32 %v2016_v26, %v1999_v17 }
 0x119   : > { %v1709_v18 = vpop.f32.mrb[12].mxu0  ;;  %v2001_v19 = vpop.f32.mrb[12].mxu1 }
 0x11a   : > { %v725_v20 = vpop.f32.mrb[13].mxu0  ;;  %v2003_v21 = vpop.f32.mrb[13].mxu1  ;;  %v2133_v60 = vadd.f32 %v1709_v18, %v2016_v26  ;;  %v2144_v13 = vadd.f32 %v2001_v19, %v2016_v26 }
 0x11b   : > { %v2005_v22 = vpop.f32.mrb[14].mxu0  ;;  %v2007_v23 = vpop.f32.mrb[14].mxu1  ;;  %v2140_v16 = vadd.f32 %v2016_v26, %v725_v20  ;;  %v2160_v17 = vadd.f32 %v2016_v26, %v2003_v21 }
 0x11c   : > { %v2009_v24 = vpop.f32.mrb[15].mxu0  ;;  %v2011_v25 = vpop.f32.mrb[15].mxu1  ;;  %v2152_v58 = vadd.f32 %v2005_v22, %v2016_v26  ;;  %v2164_v19 = vadd.f32 %v2007_v23, %v2016_v26 }
 0x11d   : > { %v2156_v18 = vadd.f32 %v2016_v26, %v2009_v24  ;;  %v2171_v22 = vadd.f32 %v2016_v26, %v2011_v25 }
 0x11e   : > { %2473 = vst [vmem:[#allocation2_spill] sm:$0xff] %v2152_v58  ;;  %2474 = vst [vmem:[#allocation3_spill] sm:$0xff] %v2164_v19 }
 0x121   : > { %v2018_v27 = vpop.f32.mrb[16].mxu0  ;;  %v2020_v28 = vpop.f32.mrb[16].mxu1 }
 0x122   : > { %v2031_v32 = vpop.f32.mrb[17].mxu0  ;;  %v2033_v33 = vpop.f32.mrb[17].mxu1  ;;  %v2187_v63 = vadd.f32 %v2018_v27, %v2016_v26  ;;  %v2206_v27 = vadd.f32 %v2020_v28, %v2016_v26 }
 0x123   : > { %v2047_v38 = vpop.f32.mrb[18].mxu0  ;;  %v2049_v39 = vpop.f32.mrb[18].mxu1  ;;  %v2198_v24 = vadd.f32 %v2016_v26, %v2031_v32 }
 0x124   : > { %v2063_v44 = vpop.f32.mrb[19].mxu0  ;;  %v2065_v45 = vpop.f32.mrb[19].mxu1  ;;  %v2202_v5 = vadd.f32 %v2047_v38, %v2016_v26  ;;  %v2220_v28 = vadd.f32 %v2049_v39, %v2016_v26 }
 0x125   : > { %v2216_v38 = vadd.f32 %v2016_v26, %v2063_v44  ;;  %v2235_v39 = vadd.f32 %v2016_v26, %v2065_v45  ;;  %v2483_v45 = vmax.f32 %v2026_v30, 0.0 }
 0x126   : > { %2477 = vst [vmem:[#allocation6_spill] sm:$0xff] %v2220_v28 }
 0x129   : > { %v2097_v2 = vpop.f32.mrb[20].mxu0  ;;  %v2099_v3 = vpop.f32.mrb[20].mxu1 }
 0x12a   : > { %v2111_v8 = vpop.f32.mrb[21].mxu0  ;;  %v2113_v9 = vpop.f32.mrb[21].mxu1 }
 0x12b   : > { %v2128_v0 = vpop.f32.mrb[22].mxu0  ;;  %v2130_v11 = vpop.f32.mrb[22].mxu1 }
 0x12c   : > { %v2146_v15 = vpop.f32.mrb[23].mxu0  ;;  %v2148_v61 = vpop.f32.mrb[23].mxu1 }
 0x131   : > { %v1721_v51 = vpop.f32.mrb[24].mxu0  ;;  %v1773_v21 = vpop.f32.mrb[24].mxu1 }
 0x132   : > { %v782_v57 = vadd.f32 %v1721_v51, %v2016_v26  ;;  %v990_v54 = vadd.f32 %v1773_v21, %v2016_v26  ;;  %v2192_v20 = vpop.f32.mrb[25].mxu0  ;;  %v2194_v56 = vpop.f32.mrb[25].mxu1  ;;  %v2210_v51 = vadd.f32 %v2016_v26, %v2033_v33 }
 0x133   : > { %2475 = vst [vmem:[#allocation4_spill] sm:$0xff] %v2192_v20  ;;  %2476 = vst [vmem:[#allocation5_spill] sm:$0xff] %v2194_v56  ;;  %v1722_v21 = vpop.f32.mrb[26].mxu0  ;;  %v1774_v23 = vpop.f32.mrb[26].mxu1 }
 0x134   : > { %v1102_v25 = vmax.f32 %v782_v57, 0.0  ;;  %v1154_v52 = vmax.f32 %v990_v54, 0.0  ;;  %v785_v50 = vadd.f32 %v1722_v21, %v2016_v26  ;;  %v993_v32 = vadd.f32 %v1774_v23, %v2016_v26  ;;  %v776_v59 = vpop.f32.mrb[27].mxu0  ;;  %v984_v55 = vpop.f32.mrb[27].mxu1 }
 0x135   : > { %v777_v33 = vadd.f32 %v2016_v26, %v776_v59  ;;  %v985_v20 = vadd.f32 %v2016_v26, %v984_v55  ;;  %v2478_v54 = vmax.f32 %v2039_v35, 0.0  ;;  %v2480_v23 = vmax.f32 %v2055_v41, 0.0 }
 0x136   : > { %v1103_v56 = vmax.f32 %v785_v50, 0.0  ;;  %v1155_v19 = vmax.f32 %v993_v32, 0.0  ;;  %v2482_v41 = vmax.f32 %v2029_v31, 0.0 }
 0x137   : > { %v2226_v57 = vmax.f32 %v2478_v54, %v1102_v25  ;;  %v2230_v21 = vmax.f32 %v2480_v23, %v1154_v52  ;;  %v1101_v58 = vmax.f32 %v777_v33, 0.0  ;;  %v1153_v59 = vmax.f32 %v985_v20, 0.0 }
 0x138   : > { %v2481_v25 = vmax.f32 %v2023_v29, 0.0  ;;  %v2243_v52 = vmax.f32 %v2482_v41, %v1155_v19  ;;  %v2485_v20 = vmax.f32 %v2042_v36, 0.0 }
 0x139   : > { %2479 = vst [vmem:[#allocation7_spill] sm:$0xff] %v2226_v57  ;;  %v2249_v23 = vmax.f32 %v2483_v45, %v1101_v58  ;;  %v1725_v55 = vpop.f32.mrb[28].mxu0  ;;  %v1777_v35 = vpop.f32.mrb[28].mxu1 }
 0x13a   : > { %v1178_v54 = vmax.f32 %v2481_v25, %v1103_v56  ;;  %v1203_v33 = vmax.f32 %v2485_v20, %v1153_v59  ;;  %v798_v31 = vadd.f32 %v1725_v55, %v2016_v26  ;;  %v1006_v19 = vadd.f32 %v1777_v35, %v2016_v26  ;;  %v789_v25 = vpop.f32.mrb[29].mxu0  ;;  %v997_v41 = vpop.f32.mrb[29].mxu1 }
 0x13b   : > { %2484 = vst [vmem:[#allocation8_spill] sm:$0xff] %v2249_v23  ;;  %v790_v58 = vadd.f32 %v2016_v26, %v789_v25  ;;  %v998_v36 = vadd.f32 %v2016_v26, %v997_v41  ;;  %v1726_v59 = vpop.f32.mrb[30].mxu0  ;;  %v1778_v45 = vpop.f32.mrb[30].mxu1  ;;  %v2487_v41 = vmax.f32 %v2083_v53, 0.0  ;;  %v2490_v53 = vmax.f32 %v2052_v40, 0.0 }
 0x13c   : > { %v1228_v30 = vmax.f32 %v1178_v54, %v1203_v33  ;;  %v1106_v20 = vmax.f32 %v798_v31, 0.0  ;;  %v1158_v32 = vmax.f32 %v1006_v19, 0.0  ;;  %v801_v56 = vadd.f32 %v1726_v59, %v2016_v26  ;;  %v792_v44 = vpop.f32.mrb[31].mxu0  ;;  %v1000_v35 = vpop.f32.mrb[31].mxu1 }
 0x13d   : > { %v1009_v55 = vadd.f32 %v1778_v45, %v2016_v26  ;;  %v1104_v29 = vmax.f32 %v790_v58, 0.0  ;;  %v1156_v57 = vmax.f32 %v998_v36, 0.0  ;;  %v793_v50 = vadd.f32 %v2016_v26, %v792_v44 }
 0x13e   : > { %v1001_v54 = vadd.f32 %v2016_v26, %v1000_v35  ;;  %v2486_v33 = vmax.f32 %v2071_v47, 0.0  ;;  %v2268_v23 = vmax.f32 %v2487_v41, %v1158_v32  ;;  %v1107_v31 = vmax.f32 %v801_v56, 0.0 }
 0x13f   : > { %v1159_v19 = vmax.f32 %v1009_v55, 0.0  ;;  %v2488_v59 = vmax.f32 %v2036_v34, 0.0  ;;  %v2489_v58 = vmax.f32 %v2045_v37, 0.0  ;;  %v1105_v28 = vmax.f32 %v793_v50, 0.0 }
 0x140   : > { %v1181_v25 = vmax.f32 %v2486_v33, %v1106_v20  ;;  %v1157_v44 = vmax.f32 %v1001_v54, 0.0  ;;  %v2277_v35 = vadd.f32 %v2097_v2, %v2016_v26  ;;  %v2281_v47 = vadd.f32 %v2099_v3, %v2016_v26 }
 0x141   : > { %v1179_v45 = vmax.f32 %v2488_v59, %v1104_v29  ;;  %v1206_v36 = vmax.f32 %v2489_v58, %v1156_v57  ;;  %v1182_v32 = vmax.f32 %v2490_v53, %v1107_v31  ;;  %v2491_v56 = vmax.f32 %v2061_v43, 0.0  ;;  %v1729_v55 = vpop.f32.mrb[32].mxu0  ;;  %v1781_v54 = vpop.f32.mrb[32].mxu1 }
 0x142   : > { %v2492_v50 = vmax.f32 %v2058_v42, 0.0  ;;  %v2493_v2 = vmax.f32 %v2074_v48, 0.0  ;;  %v2296_v3 = vadd.f32 %v2016_v26, %v2111_v8  ;;  %v2300_v40 = vadd.f32 %v2016_v26, %v2113_v9  ;;  %v805_v48 = vpop.f32.mrb[33].mxu0 }
 0x143   : > { %v2287_v34 = vmax.f32 %v2491_v56, %v1159_v19  ;;  %v1229_v37 = vmax.f32 %v1179_v45, %v2230_v21  ;;  %v1231_v57 = vmax.f32 %v1181_v25, %v1206_v36  ;;  %v814_v42 = vadd.f32 %v1729_v55, %v2016_v26  ;;  %v1730_v9 = vpop.f32.mrb[34].mxu0 }
 0x144   : > { %v1180_v29 = vmax.f32 %v2492_v50, %v1105_v28  ;;  %v1207_v20 = vmax.f32 %v2493_v2, %v1157_v44  ;;  %v1022_v43 = vadd.f32 %v1781_v54, %v2016_v26  ;;  %v1013_v28 = vpop.f32.mrb[33].mxu1  ;;  %v806_v25 = vadd.f32 %v2016_v26, %v805_v48  ;;  %v808_v58 = vpop.f32.mrb[35].mxu0 }
 0x145   : > { %v1558_v21 = vpack.c.bf16 %v1229_v37, %v1228_v30  ;;  %v1782_v41 = vpop.f32.mrb[34].mxu1  ;;  %v1110_v31 = vmax.f32 %v814_v42, 0.0  ;;  %v1014_v59 = vadd.f32 %v2016_v26, %v1013_v28  ;;  %v817_v45 = vadd.f32 %v1730_v9, %v2016_v26 }
 0x146   : > { %v1230_v8 = vmax.f32 %v1180_v29, %v2243_v52  ;;  %v1232_v33 = vmax.f32 %v1182_v32, %v1207_v20  ;;  %v1162_v19 = vmax.f32 %v1022_v43, 0.0  ;;  %v1016_v36 = vpop.f32.mrb[35].mxu1  ;;  %v1108_v53 = vmax.f32 %v806_v25, 0.0 }
 0x147   : > { %1610 = vst [vmem:[%s2305_s13 + $0x8] sm:$0xff] %v1558_v21   ;;  %v1025_v30 = vadd.f32 %v1782_v41, %v2016_v26  ;;  %v809_v52 = vadd.f32 %v2016_v26, %v808_v58  ;;  %v2494_v32 = vmax.f32 %v2119_v62, 0.0  ;;  %v2495_v37 = vmax.f32 %v2137_v14, 0.0 }
 0x148   : > { %v1563_v44 = vpack.c.bf16 %v1231_v57, %v1230_v8  ;;  %v1160_v29 = vmax.f32 %v1014_v59, 0.0  ;;  %v1111_v2 = vmax.f32 %v817_v45, 0.0  ;;  %v2496_v20 = vmax.f32 %v2068_v46, 0.0 }
 0x149   : > { %v1185_v56 = vmax.f32 %v2494_v32, %v1110_v31  ;;  %v2320_v50 = vmax.f32 %v2495_v37, %v1162_v19  ;;  %v1163_v54 = vmax.f32 %v1025_v30, 0.0  ;;  %v1109_v57 = vmax.f32 %v809_v52, 0.0  ;;  %v1733_v19 = vpop.f32.mrb[36].mxu0  ;;  %v1785_v59 = vpop.f32.mrb[36].mxu1 }
 0x14a   : > { %1611 = vst [vmem:[%s2305_s13 + $0x10] sm:$0xff] %v1563_v44   ;;  %v1183_v55 = vmax.f32 %v2496_v20, %v1108_v53  ;;  %v1017_v42 = vadd.f32 %v2016_v26, %v1016_v36  ;;  %v1098_v43 = vmax.f32 %v2277_v35, 0.0  ;;  %v2329_v62 = vadd.f32 %v2128_v0, %v2016_v26  ;;  %v821_v58 = vpop.f32.mrb[37].mxu0 }
 0x14b   : > { %v2497_v14 = vmax.f32 %v2077_v49, 0.0  ;;  %v2498_v28 = vmax.f32 %v2102_v4, 0.0  ;;  %v2499_v46 = vmax.f32 %v2109_v7, 0.0  ;;  %v2500_v9 = vmax.f32 %v2106_v6, 0.0  ;;  %v1734_v30 = vpop.f32.mrb[38].mxu0 }
 0x14c   : > { %v1233_v8 = vmax.f32 %v1183_v55, %v2268_v23  ;;  %v1161_v31 = vmax.f32 %v1017_v42, 0.0  ;;  %v1150_v0 = vmax.f32 %v2281_v47, 0.0  ;;  %v830_v49 = vadd.f32 %v1733_v19, %v2016_v26  ;;  %v1029_v23 = vpop.f32.mrb[37].mxu1 }
 0x14d   : > { %v1210_v48 = vmax.f32 %v2497_v14, %v1160_v29  ;;  %v1186_v21 = vmax.f32 %v2498_v28, %v1111_v2  ;;  %v2338_v25 = vmax.f32 %v2499_v46, %v1163_v54  ;;  %v1184_v41 = vmax.f32 %v2500_v9, %v1109_v57  ;;  %v1786_v52 = vpop.f32.mrb[38].mxu1  ;;  %v824_v2 = vpop.f32.mrb[39].mxu0 }
 0x14e   : > { %v1038_v4 = vadd.f32 %v1785_v59, %v2016_v26  ;;  %v1568_v36 = vpack.c.bf16 %v1233_v8, %v1232_v33  ;;  %v2501_v44 = vmax.f32 %v2123_v10, 0.0  ;;  %v822_v53 = vadd.f32 %v2016_v26, %v821_v58  ;;  %v1032_v20 = vpop.f32.mrb[39].mxu1 }
 0x14f   : > { %v1235_v45 = vmax.f32 %v1185_v56, %v1210_v48  ;;  %v1234_v7 = vmax.f32 %v1184_v41, %v2287_v34  ;;  %v1114_v32 = vmax.f32 %v830_v49, 0.0  ;;  %v1030_v37 = vadd.f32 %v2016_v26, %v1029_v23 }
 0x150   : > { %v1211_v6 = vmax.f32 %v2501_v44, %v1161_v31  ;;  %v1166_v56 = vmax.f32 %v1038_v4, 0.0  ;;  %v833_v29 = vadd.f32 %v1734_v30, %v2016_v26  ;;  %1612 = vst [vmem:[%s2305_s13 + $0x18] sm:$0xff] %v1568_v36   ;;  %v1112_v34 = vmax.f32 %v822_v53, 0.0 }
 0x151   : > { %v1573_v33 = vpack.c.bf16 %v1235_v45, %v1234_v7  ;;  %v1041_v10 = vadd.f32 %v1786_v52, %v2016_v26  ;;  %v2502_v54 = vmax.f32 %v2156_v18, 0.0  ;;  %v2503_v42 = vmax.f32 %v2171_v22, 0.0  ;;  %v1789_v36 = vpop.f32.mrb[40].mxu1 }
 0x152   : > { %v1236_v55 = vmax.f32 %v1186_v21, %v1211_v6  ;;  %v1164_v48 = vmax.f32 %v1030_v37, 0.0  ;;  %v1115_v28 = vmax.f32 %v833_v29, 0.0  ;;  %v2504_v8 = vmax.f32 %v2116_v1, 0.0 }
 0x153   : > { %v1189_v57 = vmax.f32 %v2502_v54, %v1114_v32  ;;  %v2357_v14 = vmax.f32 %v2503_v42, %v1166_v56  ;;  %1613 = vst [vmem:[%s2305_s13 + $0x20] sm:$0xff] %v1573_v33   ;;  %v1167_v9 = vmax.f32 %v1041_v10, 0.0  ;;  %v825_v41 = vadd.f32 %v2016_v26, %v824_v2 }
 0x154   : > { %v1187_v46 = vmax.f32 %v2504_v8, %v1112_v34  ;;  %v1033_v21 = vadd.f32 %v2016_v26, %v1032_v20  ;;  %v2366_v31 = vadd.f32 %v2016_v26, %v2146_v15  ;;  %v2370_v18 = vadd.f32 %v2130_v11, %v2016_v26  ;;  %v1737_v15 = vpop.f32.mrb[40].mxu0 }
 0x155   : > { %v2505_v22 = vmax.f32 %v2126_v12, 0.0  ;;  %v2506_v59 = vmax.f32 %v2133_v60, 0.0  ;;  %v2507_v49 = vmax.f32 %v2144_v13, 0.0  ;;  %v1113_v58 = vmax.f32 %v825_v41, 0.0  ;;  %v837_v44 = vpop.f32.mrb[41].mxu0 }
 0x156   : > { %v1237_v45 = vmax.f32 %v1187_v46, %v2320_v50  ;;  %v1165_v23 = vmax.f32 %v1033_v21, 0.0  ;;  %v2383_v11 = vadd.f32 %v2016_v26, %v2148_v61  ;;  %v846_v12 = vadd.f32 %v1737_v15, %v2016_v26  ;;  %v1045_v50 = vpop.f32.mrb[41].mxu1  ;;  %v1738_v56 = vpop.f32.mrb[42].mxu0 }
 0x157   : > { %v1214_v19 = vmax.f32 %v2505_v22, %v1164_v48  ;;  %v1190_v1 = vmax.f32 %v2506_v59, %v1115_v28  ;;  %v2379_v4 = vmax.f32 %v2507_v49, %v1167_v9  ;;  %v1054_v60 = vadd.f32 %v1789_v36, %v2016_v26  ;;  %v1790_v61 = vpop.f32.mrb[42].mxu1  ;;  %v840_v33 = vpop.f32.mrb[43].mxu0  ;;  %v2512_v9 = vld [vmem:[#allocation2_spill] sm:$0xff]  ;;  %v2514_v59 = vld [vmem:[#allocation3_spill] sm:$0xff] }
 0x158   : > { %v1578_v6 = vpack.c.bf16 %v1237_v45, %v1236_v55  ;;  %v2508_v13 = vmax.f32 %v2140_v16, 0.0  ;;  %v2509_v30 = vmax.f32 %v2160_v17, 0.0  ;;  %v838_v32 = vadd.f32 %v2016_v26, %v837_v44  ;;  %v1048_v34 = vpop.f32.mrb[43].mxu1 }
 0x159   : > { %v1239_v7 = vmax.f32 %v1189_v57, %v1214_v19  ;;  %v1118_v37 = vmax.f32 %v846_v12, 0.0  ;;  %v1170_v29 = vmax.f32 %v1054_v60, 0.0  ;;  %v1046_v2 = vadd.f32 %v2016_v26, %v1045_v50  ;;  %v1741_v12 = vpop.f32.mrb[44].mxu0 }
 0x15a   : > { %v1188_v53 = vmax.f32 %v2508_v13, %v1113_v58  ;;  %v1215_v52 = vmax.f32 %v2509_v30, %v1165_v23  ;;  %v849_v20 = vadd.f32 %v1738_v56, %v2016_v26  ;;  %1614 = vst [vmem:[%s2305_s13 + $0x28] sm:$0xff] %v1578_v6   ;;  %v1116_v10 = vmax.f32 %v838_v32, 0.0  ;;  %v853_v6 = vpop.f32.mrb[45].mxu0 }
 0x15b   : > { %v1057_v17 = vadd.f32 %v1790_v61, %v2016_v26  ;;  %v2510_v54 = vmax.f32 %v2216_v38, 0.0  ;;  %v2511_v42 = vmax.f32 %v2235_v39, 0.0  ;;  %v1168_v28 = vmax.f32 %v1046_v2, 0.0 }
 0x15c   : > { %v1238_v55 = vmax.f32 %v1188_v53, %v2338_v25  ;;  %v1240_v16 = vmax.f32 %v1190_v1, %v1215_v52  ;;  %v1119_v8 = vmax.f32 %v849_v20, 0.0  ;;  %v2513_v41 = vmax.f32 %v2512_v9, 0.0  ;;  %v1742_v52 = vpop.f32.mrb[46].mxu0 }
 0x15d   : > { %v1193_v57 = vmax.f32 %v2510_v54, %v1118_v37  ;;  %v2401_v48 = vmax.f32 %v2511_v42, %v1170_v29  ;;  %v1171_v22 = vmax.f32 %v1057_v17, 0.0  ;;  %v841_v25 = vadd.f32 %v2016_v26, %v840_v33  ;;  %v856_v20 = vpop.f32.mrb[47].mxu0 }
 0x15e   : > { %v1583_v46 = vpack.c.bf16 %v1239_v7, %v1238_v55  ;;  %v1191_v21 = vmax.f32 %v2513_v41, %v1116_v10  ;;  %v1097_v19 = vmax.f32 %v2366_v31, 0.0  ;;  %v2515_v1 = vmax.f32 %v2514_v59, 0.0  ;;  %v1793_v31 = vpop.f32.mrb[44].mxu1 }
 0x15f   : > { %v2516_v38 = vmax.f32 %v2187_v63, 0.0  ;;  %v1049_v39 = vadd.f32 %v2016_v26, %v1048_v34  ;;  %v1149_v58 = vmax.f32 %v2383_v11, 0.0  ;;  %v2517_v15 = vmax.f32 %v2206_v27, 0.0  ;;  %v1061_v13 = vpop.f32.mrb[45].mxu1 }
 0x160   : > { %v1218_v45 = vmax.f32 %v2515_v1, %v1168_v28  ;;  %1615 = vst [vmem:[%s2305_s13 + $0x30] sm:$0xff] %v1583_v46   ;;  %v1241_v23 = vmax.f32 %v1191_v21, %v2357_v14  ;;  %v1117_v7 = vmax.f32 %v841_v25, 0.0  ;;  %v862_v50 = vadd.f32 %v1741_v12, %v2016_v26  ;;  %v1794_v32 = vpop.f32.mrb[46].mxu1 }
 0x161   : > { %v1194_v49 = vmax.f32 %v2516_v38, %v1119_v8  ;;  %v2417_v36 = vmax.f32 %v2517_v15, %v1171_v22  ;;  %v1169_v44 = vmax.f32 %v1049_v39, 0.0  ;;  %v1070_v63 = vadd.f32 %v1793_v31, %v2016_v26  ;;  %v1064_v33 = vpop.f32.mrb[47].mxu1  ;;  %v2521_v8 = vld [vmem:[#allocation6_spill] sm:$0xff]  ;;  %v1745_v38 = vpop.f32.mrb[48].mxu0 }
 0x162   : > { %v1243_v60 = vmax.f32 %v1193_v57, %v1218_v45  ;;  %v1588_v11 = vpack.c.bf16 %v1241_v23, %v1240_v16  ;;  %v2518_v53 = vmax.f32 %v2198_v24, 0.0  ;;  %v854_v27 = vadd.f32 %v2016_v26, %v853_v6  ;;  %v869_v39 = vpop.f32.mrb[49].mxu0  ;;  %v2524_v23 = vld [vmem:[#allocation4_spill] sm:$0xff] }
 0x163   : > { %v1062_v30 = vadd.f32 %v2016_v26, %v1061_v13  ;;  %v2519_v56 = vmax.f32 %v2210_v51, 0.0  ;;  %v1122_v37 = vmax.f32 %v862_v50, 0.0  ;;  %v1174_v29 = vmax.f32 %v1070_v63, 0.0  ;;  %v1746_v12 = vpop.f32.mrb[50].mxu0 }
 0x164   : > { %v1192_v14 = vmax.f32 %v2518_v53, %v1117_v7  ;;  %v865_v2 = vadd.f32 %v1742_v52, %v2016_v26  ;;  %1616 = vst [vmem:[%s2305_s13 + $0x38] sm:$0xff] %v1588_v11   ;;  %v1120_v24 = vmax.f32 %v854_v27, 0.0  ;;  %v1073_v16 = vadd.f32 %v1794_v32, %v2016_v26  ;;  %v2525_v32 = vld [vmem:[#allocation8_spill] sm:$0xff] }
 0x165   : > { %v1219_v61 = vmax.f32 %v2519_v56, %v1169_v44  ;;  %v1172_v55 = vmax.f32 %v1062_v30, 0.0  ;;  %v1197_v17 = vmax.f32 %v1097_v19, %v1122_v37  ;;  %v1224_v54 = vmax.f32 %v1149_v58, %v1174_v29  ;;  %v2523_v19 = vld [vmem:[#allocation5_spill] sm:$0xff]  ;;  %v2526_v29 = vld [vmem:[#allocation7_spill] sm:$0xff] }
 0x166   : > { %v1242_v34 = vmax.f32 %v1192_v14, %v2379_v4  ;;  %v1123_v57 = vmax.f32 %v865_v2, 0.0  ;;  %v2520_v42 = vmax.f32 %v2202_v5, 0.0  ;;  %v2522_v46 = vmax.f32 %v2521_v8, 0.0 }
 0x167   : > { %v1244_v10 = vmax.f32 %v1194_v49, %v1219_v61  ;;  %v1175_v41 = vmax.f32 %v1073_v16, 0.0  ;;  %v1096_v21 = vmax.f32 %v2296_v3, 0.0  ;;  %v857_v22 = vadd.f32 %v2016_v26, %v856_v20 }
 0x168   : > { %v1593_v51 = vpack.c.bf16 %v1243_v60, %v1242_v34  ;;  %v1195_v28 = vmax.f32 %v2520_v42, %v1120_v24  ;;  %v1222_v9 = vmax.f32 %v2522_v46, %v1172_v55  ;;  %v1198_v4 = vmax.f32 %v1098_v43, %v1123_v57  ;;  %v872_v60 = vpop.f32.mrb[51].mxu0 }
 0x169   : > { %v1065_v25 = vadd.f32 %v2016_v26, %v1064_v33  ;;  %v982_v59 = vadd.f32 %v2016_v26, %v2523_v19  ;;  %v1225_v45 = vmax.f32 %v1150_v0, %v1175_v41  ;;  %v1148_v3 = vmax.f32 %v2300_v40, 0.0 }
 0x16a   : > { %1617 = vst [vmem:[%s2305_s13 + $0x40] sm:$0xff] %v1593_v51   ;;  %v1245_v5 = vmax.f32 %v1195_v28, %v2401_v48  ;;  %v1247_v1 = vmax.f32 %v1197_v17, %v1222_v9  ;;  %v1121_v49 = vmax.f32 %v857_v22, 0.0  ;;  %v878_v43 = vadd.f32 %v1745_v38, %v2016_v26 }
 0x16b   : > { %v1173_v35 = vmax.f32 %v1065_v25, 0.0  ;;  %v1151_v58 = vmax.f32 %v2370_v18, 0.0  ;;  %v774_v15 = vadd.f32 %v2016_v26, %v2524_v23  ;;  %v870_v48 = vadd.f32 %v2016_v26, %v869_v39 }
 0x16c   : > { %v1598_v7 = vpack.c.bf16 %v1245_v5, %v1244_v10  ;;  %v1196_v47 = vmax.f32 %v1096_v21, %v1121_v49  ;;  %v1126_v31 = vmax.f32 %v878_v43, 0.0  ;;  %v881_v40 = vadd.f32 %v1746_v12, %v2016_v26 }
 0x16d   : > { %v1223_v0 = vmax.f32 %v1148_v3, %v1173_v35  ;;  %v1099_v44 = vmax.f32 %v2329_v62, 0.0  ;;  %v1152_v50 = vmax.f32 %v982_v59, 0.0  ;;  %v1124_v63 = vmax.f32 %v870_v48, 0.0 }
 0x16e   : > { %1618 = vst [vmem:[%s2305_s13 + $0x48] sm:$0xff] %v1598_v7   ;;  %v873_v18 = vadd.f32 %v2016_v26, %v872_v60  ;;  %v1246_v6 = vmax.f32 %v1196_v47, %v2417_v36  ;;  %v1201_v11 = vmax.f32 %v1126_v31, %v1151_v58  ;;  %v1127_v53 = vmax.f32 %v881_v40, 0.0 }
 0x16f   : > { %v1248_v13 = vmax.f32 %v1198_v4, %v1223_v0  ;;  %v1100_v14 = vmax.f32 %v774_v15, 0.0  ;;  %v1199_v27 = vmax.f32 %v1099_v44, %v1124_v63 }
 0x170   : > { %v1125_v30 = vmax.f32 %v873_v18, 0.0  ;;  %v1603_v52 = vpack.c.bf16 %v1247_v1, %v1246_v6  ;;  %v1226_v62 = vmax.f32 %v2525_v32, %v1201_v11  ;;  %v1202_v56 = vmax.f32 %v1127_v53, %v1152_v50 }
 0x171   : > { %v1249_v61 = vmax.f32 %v1199_v27, %v1224_v54 }
 0x172   : > { %v1200_v37 = vmax.f32 %v1100_v14, %v1125_v30  ;;  %1619 = vst [vmem:[%s2305_s13 + $0x50] sm:$0xff] %v1603_v52   ;;  %v1227_v26 = vmax.f32 %v2526_v29, %v1202_v56 }
 0x173   : > { %v1608_v2 = vpack.c.bf16 %v1249_v61, %v1248_v13 }
 0x174   : > { %v1250_v36 = vmax.f32 %v1200_v37, %v1225_v45  ;;  %v1553_v20 = vpack.c.bf16 %v1227_v26, %v1226_v62 }
 0x175   : > { %1620 = vst [vmem:[%s2305_s13 + $0x58] sm:$0xff] %v1608_v2  }
 0x176   : > { %v1549_v33 = vpack.c.bf16 %v1250_v36, %v1250_v36  ;;  %1554 = vst [vmem:[%s2305_s13] sm:$0xff] %v1553_v20  }
 0x178   : > { %1376 = vst [vmem:[%s2305_s13 + $0x60] sm:$0x3] %v1549_v33 }
 0x179 PF: > { %s13_s12 = sadd.s32 1, %s1885_s12  }
 0x17a   : > { %p10_p4 = scmp.ge.s32.totalorder %s13_s12, 4  }
 0x17c   :  { %12 = sbr.rel (!%p10_p4) target bundleno = 1 (0x1), region = 62 }

// kernel: lenet_forward.4
= control target key start
LH: loop header
LB: loop body
LE: loop exit
PB: predicated region body
PF: predicated region fallthrough
CT: control target
= control target key end

     0   :  { %s823_s12 = smov 0   ;;  %s913_s0 = inlined_call_operand.vmem [shape: bf16[2,128,256], index: 0, kind: input, shape index: {}]   ;;  %s914_s1 = inlined_call_operand.vmem [shape: bf16[256,128], index: 1, kind: input, shape index: {}]   ;;  %s915_s2 = inlined_call_operand.vmem [shape: f32[1,128], index: 2, kind: input, shape index: {}]   ;;  %s916_s3 = inlined_call_operand.vmem [shape: bf16[2,25,128], index: 3, kind: output, shape index: {}]  }
   0x1 LB: > { %s608_s13 = sadd.s32 4294967295, %s801_s12   ;;  %p612_p0 = scmp.ge.s32.totalorder %s801_s12, 1  ;;  %s801_s12 = sphi %s823_s12, %s13_s12  }
   0x2   : > { %p137_p1 = scmp.lt.s32.totalorder %s801_s12, 3 }
   0x4   : > { %p138_p2 = pnand %p612_p0, %p137_p1 }
   0x5   : > { %v755_v0 = vld [vmem:[%s914_s1 + $0x40] sm:$0xff] (!%p138_p2)   ;;  %v757_v2 = vld [vmem:[%s914_s1 + $0x48] sm:$0xff] (!%p138_p2)   ;;  %p161_p3 = scmp.lt.s32.totalorder (!%p138_p2), %s608_s13, 1  ;;  %v759_v4 = vld [vmem:[%s914_s1 + $0x50] sm:$0xff] (!%p138_p2)   ;;  %vm547_vm0 = vcmask (!%p138_p2), 1040384  }
   0x6   : > { %141 = sbr.rel (%p138_p2) target bundleno = 291 (0x123), region = 32  ;;  %v756_v1 = vld [vmem:[%s914_s1] sm:$0xff] (!%p138_p2)   ;;  %667 = vmatprep.subr.bf16.mxu0 (!%p138_p2), %v755_v0  ;;  %731 = vmatprep.subr.bf16.mxu1 (!%p138_p2), %v755_v0  ;;  %v758_v3 = vld [vmem:[%s914_s1 + $0x8] sm:$0xff] (!%p138_p2)   ;;  %v760_v5 = vld [vmem:[%s914_s1 + $0x10] sm:$0xff] (!%p138_p2)   ;;  %vm548_vm1 = vsmask.f32 (!%p138_p2), 256 }
   0x7   : > { %668 = vmatpush3.bf16.msra.mxu0 (!%p138_p2), %v756_v1  ;;  %739 = vmatpush3.bf16.msra.mxu1 (!%p138_p2), %v756_v1  ;;  %v761_v6 = vld [vmem:[%s914_s1 + $0x58] sm:$0xff] (!%p138_p2)   ;;  %v763_v8 = vld [vmem:[%s914_s1 + $0x60] sm:$0xff] (!%p138_p2)   ;;  %v765_v10 = vld [vmem:[%s914_s1 + $0x68] sm:$0xff] (!%p138_p2)  }
   0x8   : > { %669 = vmatprep.subr.bf16.mxu0 (!%p138_p2), %v757_v2  ;;  %732 = vmatprep.subr.bf16.mxu1 (!%p138_p2), %v757_v2  ;;  %v762_v7 = vld [vmem:[%s914_s1 + $0x18] sm:$0xff] (!%p138_p2)   ;;  %v764_v9 = vld [vmem:[%s914_s1 + $0x20] sm:$0xff] (!%p138_p2)   ;;  %v766_v13 = vld [vmem:[%s914_s1 + $0x28] sm:$0xff] (!%p138_p2)  }
   0x9   : > { %v767_v14 = vld [vmem:[%s914_s1 + $0x70] sm:$0xff] (!%p138_p2)   ;;  %v769_v16 = vld [vmem:[%s914_s1 + $0x78] sm:$0xff] (!%p138_p2)   ;;  %v617_v56 = vld [vmem:[%s915_s2] ss:$0 sm:$0xff] (!%p138_p2) }
   0xa   : > { %v768_v15 = vld [vmem:[%s914_s1 + $0x30] sm:$0xff] (!%p138_p2)   ;;  %v770_v17 = vld [vmem:[%s914_s1 + $0x38] sm:$0xff] (!%p138_p2)   ;;  %vm549_vm2 = vmand (!%p138_p2), %vm547_vm0, %vm548_vm1 }
   0xb   : > { %670 = vmatpush3.bf16.msra.mxu0 (!%p138_p2), %v758_v3  ;;  %740 = vmatpush3.bf16.msra.mxu1 (!%p138_p2), %v758_v3 }
   0xc   : > { %671 = vmatprep.subr.bf16.mxu0 (!%p138_p2), %v759_v4  ;;  %733 = vmatprep.subr.bf16.mxu1 (!%p138_p2), %v759_v4 }
   0xd   : > { %s918_s13 = smov (!%p161_p3, %s608_s13), 1 }
   0xe   : > { %s656_s30 = sshll.u32 %s918_s13, 7  ;;  %s657_s27 = sshll.u32 %s918_s13, 4 }
   0xf   : > { %672 = vmatpush3.bf16.msra.mxu0 %v760_v5  ;;  %741 = vmatpush3.bf16.msra.mxu1 %v760_v5  ;;  %s864_s8 = scalar_lea.vmem %s913_s0, %s656_s30  ;;  %s170_s30 = scalar_lea.vmem %s916_s3, %s657_s27 }
  0x10   : > { %673 = vmatprep.subr.bf16.mxu0 %v761_v6  ;;  %734 = vmatprep.subr.bf16.mxu1 %v761_v6  ;;  %v773_v11 = vld [vmem:[%s864_s8 + $0x4] ss:$8 sps:$4 sm:$0xff]   ;;  %v771_v18 = vld [vmem:[%s864_s8] ss:$8 sps:$4 sm:$0xff]   ;;  %v777_v20 = vld [vmem:[%s864_s8 + $0x14] ss:$8 sps:$4 sm:$0xff]  }
  0x11   : > { %v776_v12 = vld [vmem:[%s864_s8 + $0x44] ss:$8 sps:$4 sm:$0xff]   ;;  %435 = vmatprep.mubr.bf16.mxu0 %v773_v11  ;;  %v774_v19 = vld [vmem:[%s864_s8 + $0x40] ss:$8 sps:$4 sm:$0xff]   ;;  %v779_v21 = vld [vmem:[%s864_s8 + $0x54] ss:$8 sps:$4 sm:$0xff]  }
  0x12   : > { %467 = vmatprep.mubr.bf16.mxu1 %v776_v12  ;;  %v781_v22 = vld [vmem:[%s864_s8 + $0x10] ss:$8 sps:$4 sm:$0xff]   ;;  %v783_v24 = vld [vmem:[%s864_s8 + $0x24] ss:$8 sps:$4 sm:$0xff]   ;;  %v787_v26 = vld [vmem:[%s864_s8 + $0x20] ss:$8 sps:$4 sm:$0xff]  }
  0x13   : > { %674 = vmatpush3.bf16.msra.mxu0 %v762_v7  ;;  %742 = vmatpush3.bf16.msra.mxu1 %v762_v7  ;;  %v782_v23 = vld [vmem:[%s864_s8 + $0x50] ss:$8 sps:$4 sm:$0xff]   ;;  %v785_v25 = vld [vmem:[%s864_s8 + $0x64] ss:$8 sps:$4 sm:$0xff]   ;;  %v788_v27 = vld [vmem:[%s864_s8 + $0x60] ss:$8 sps:$4 sm:$0xff]  }
  0x14   : > { %675 = vmatprep.subr.bf16.mxu0 %v763_v8  ;;  %735 = vmatprep.subr.bf16.mxu1 %v763_v8  ;;  %v789_v28 = vld [vmem:[%s864_s8 + $0x34] ss:$8 sps:$4 sm:$0xff]   ;;  %v793_v30 = vld [vmem:[%s864_s8 + $0x30] ss:$8 sps:$4 sm:$0xff]  }
  0x15   : > { %v791_v29 = vld [vmem:[%s864_s8 + $0x74] ss:$8 sps:$4 sm:$0xff]   ;;  %v794_v31 = vld [vmem:[%s864_s8 + $0x70] ss:$8 sps:$4 sm:$0xff]  }
  0x17   : > { %676 = vmatpush3.bf16.msra.mxu0 %v764_v9  ;;  %743 = vmatpush3.bf16.msra.mxu1 %v764_v9 }
  0x18   : > { %677 = vmatprep.subr.bf16.mxu0 %v765_v10  ;;  %736 = vmatprep.subr.bf16.mxu1 %v765_v10 }
  0x1b   : > { %678 = vmatpush3.bf16.msra.mxu0 %v766_v13  ;;  %744 = vmatpush3.bf16.msra.mxu1 %v766_v13 }
  0x1c   : > { %679 = vmatprep.subr.bf16.mxu0 %v767_v14  ;;  %737 = vmatprep.subr.bf16.mxu1 %v767_v14 }
  0x1f   : > { %680 = vmatpush3.bf16.msra.mxu0 %v768_v15  ;;  %745 = vmatpush3.bf16.msra.mxu1 %v768_v15 }
  0x20   : > { %681 = vmatprep.subr.bf16.mxu0 %v769_v16  ;;  %738 = vmatprep.subr.bf16.mxu1 %v769_v16 }
  0x23   : > { %682 = vmatpush3.bf16.msra.mxu0 %v770_v17  ;;  %746 = vmatpush3.bf16.msra.mxu1 %v770_v17 }
  0x26   : > { %436 = vmatmul.mubr.bf16.vlgmr.msra.gmra.mrb[0].mxu0 %v771_v18  ;;  %468 = vmatmul.mubr.bf16.vlgmr.msra.gmra.mrb[0].mxu1 %v774_v19 }
  0x27   : > { %443 = vmatprep.mubr.bf16.mxu0 %v777_v20  ;;  %475 = vmatprep.mubr.bf16.mxu1 %v779_v21 }
  0x2e   : > { %444 = vmatmul.mubr.bf16.gmra.mrb[4].mxu0 %v781_v22  ;;  %476 = vmatmul.mubr.bf16.gmra.mrb[4].mxu1 %v782_v23 }
  0x2f   : > { %451 = vmatprep.mubr.bf16.mxu0 %v783_v24  ;;  %483 = vmatprep.mubr.bf16.mxu1 %v785_v25 }
  0x36   : > { %452 = vmatmul.mubr.bf16.gmra.mrb[8].mxu0 %v787_v26  ;;  %484 = vmatmul.mubr.bf16.gmra.mrb[8].mxu1 %v788_v27 }
  0x37   : > { %459 = vmatprep.mubr.bf16.mxu0 %v789_v28  ;;  %491 = vmatprep.mubr.bf16.mxu1 %v791_v29 }
  0x3e   : > { %460 = vmatmul.mubr.bf16.gmra.mrb[12].mxu0 %v793_v30  ;;  %492 = vmatmul.mubr.bf16.gmra.mrb[12].mxu1 %v794_v31 }
  0xf9   : > { %v683_v32 = vpop.f32.mrb[0].mxu0  ;;  %v707_v33 = vpop.f32.mrb[0].mxu1 }
  0xfa   : > { %v684_v34 = vpop.f32.mrb[1].mxu0  ;;  %v708_v35 = vpop.f32.mrb[1].mxu1 }
  0xfb   : > { %v685_v36 = vadd.f32 %v684_v34, %v683_v32  ;;  %v709_v37 = vadd.f32 %v708_v35, %v707_v33  ;;  %v686_v38 = vpop.f32.mrb[2].mxu0  ;;  %v710_v39 = vpop.f32.mrb[2].mxu1 }
  0xfc   : > { %v687_v40 = vpop.f32.mrb[3].mxu0  ;;  %v711_v41 = vpop.f32.mrb[3].mxu1 }
  0xfd   : > { %v688_v42 = vadd.f32 %v687_v40, %v686_v38  ;;  %v712_v43 = vadd.f32 %v711_v41, %v710_v39  ;;  %v438_v59 = vadd.f32 %v685_v36, %v617_v56  ;;  %v470_v60 = vadd.f32 %v709_v37, %v617_v56 }
  0xff   : > { %v441_v3 = vadd.f32 %v688_v42, %v617_v56  ;;  %v473_v4 = vadd.f32 %v712_v43, %v617_v56  ;;  %v500_v11 = vmax.f32 %v438_v59, 0.0  ;;  %v508_v12 = vmax.f32 %v470_v60, 0.0 }
 0x101   : > { %v689_v44 = vpop.f32.mrb[4].mxu0  ;;  %v713_v45 = vpop.f32.mrb[4].mxu1  ;;  %v501_v17 = vmax.f32 %v441_v3, 0.0  ;;  %v509_v18 = vmax.f32 %v473_v4, 0.0 }
 0x102   : > { %v690_v46 = vpop.f32.mrb[5].mxu0  ;;  %v714_v47 = vpop.f32.mrb[5].mxu1 }
 0x103   : > { %v691_v48 = vadd.f32 %v690_v46, %v689_v44  ;;  %v715_v49 = vadd.f32 %v714_v47, %v713_v45  ;;  %v692_v50 = vpop.f32.mrb[6].mxu0  ;;  %v716_v51 = vpop.f32.mrb[6].mxu1 }
 0x104   : > { %v693_v52 = vpop.f32.mrb[7].mxu0  ;;  %v717_v53 = vpop.f32.mrb[7].mxu1 }
 0x105   : > { %v694_v54 = vadd.f32 %v693_v52, %v692_v50  ;;  %v718_v55 = vadd.f32 %v717_v53, %v716_v51  ;;  %v446_v25 = vadd.f32 %v691_v48, %v617_v56  ;;  %v478_v34 = vadd.f32 %v715_v49, %v617_v56 }
 0x107   : > { %v449_v35 = vadd.f32 %v694_v54, %v617_v56  ;;  %v481_v36 = vadd.f32 %v718_v55, %v617_v56  ;;  %v502_v44 = vmax.f32 %v446_v25, 0.0  ;;  %v510_v49 = vmax.f32 %v478_v34, 0.0 }
 0x109   : > { %v695_v57 = vpop.f32.mrb[8].mxu0  ;;  %v719_v58 = vpop.f32.mrb[8].mxu1  ;;  %v503_v51 = vmax.f32 %v449_v35, 0.0  ;;  %v511_v53 = vmax.f32 %v481_v36, 0.0 }
 0x10a   : > { %v696_v61 = vpop.f32.mrb[9].mxu0  ;;  %v720_v62 = vpop.f32.mrb[9].mxu1 }
 0x10b   : > { %v697_v63 = vadd.f32 %v696_v61, %v695_v57  ;;  %v721_v0 = vadd.f32 %v720_v62, %v719_v58  ;;  %v698_v1 = vpop.f32.mrb[10].mxu0  ;;  %v722_v2 = vpop.f32.mrb[10].mxu1 }
 0x10c   : > { %v699_v5 = vpop.f32.mrb[11].mxu0  ;;  %v723_v6 = vpop.f32.mrb[11].mxu1 }
 0x10d   : > { %v454_v7 = vadd.f32 %v697_v63, %v617_v56  ;;  %v486_v8 = vadd.f32 %v721_v0, %v617_v56  ;;  %v700_v9 = vadd.f32 %v699_v5, %v698_v1  ;;  %v724_v10 = vadd.f32 %v723_v6, %v722_v2  ;;  %v550_v0 = vld [vmem:[%s170_s30 + $0xc] sm:$0x1] }
 0x10f   : > { %v504_v13 = vmax.f32 %v454_v7, 0.0  ;;  %v512_v14 = vmax.f32 %v486_v8, 0.0  ;;  %v457_v15 = vadd.f32 %v700_v9, %v617_v56  ;;  %v489_v16 = vadd.f32 %v724_v10, %v617_v56 }
 0x111   : > { %v516_v19 = vmax.f32 %v500_v11, %v504_v13  ;;  %v520_v20 = vmax.f32 %v508_v12, %v512_v14  ;;  %v505_v21 = vmax.f32 %v457_v15, 0.0  ;;  %v513_v22 = vmax.f32 %v489_v16, 0.0  ;;  %v701_v23 = vpop.f32.mrb[12].mxu0  ;;  %v725_v24 = vpop.f32.mrb[12].mxu1 }
 0x112   : > { %v702_v26 = vpop.f32.mrb[13].mxu0  ;;  %v726_v27 = vpop.f32.mrb[13].mxu1 }
 0x113   : > { %v524_v28 = vmax.f32 %v516_v19, %v520_v20  ;;  %v517_v29 = vmax.f32 %v501_v17, %v505_v21  ;;  %v521_v30 = vmax.f32 %v509_v18, %v513_v22  ;;  %v703_v31 = vadd.f32 %v702_v26, %v701_v23  ;;  %v704_v32 = vpop.f32.mrb[14].mxu0  ;;  %v728_v33 = vpop.f32.mrb[14].mxu1 }
 0x114   : > { %v727_v37 = vadd.f32 %v726_v27, %v725_v24  ;;  %v705_v38 = vpop.f32.mrb[15].mxu0  ;;  %v729_v39 = vpop.f32.mrb[15].mxu1 }
 0x115   : > { %v525_v40 = vmax.f32 %v517_v29, %v521_v30  ;;  %v462_v41 = vadd.f32 %v703_v31, %v617_v56  ;;  %v706_v42 = vadd.f32 %v705_v38, %v704_v32  ;;  %v730_v43 = vadd.f32 %v729_v39, %v728_v33 }
 0x116   : > { %v494_v45 = vadd.f32 %v727_v37, %v617_v56 }
 0x117   : > { %v665_v46 = vpack.c.bf16 %v525_v40, %v524_v28  ;;  %v506_v47 = vmax.f32 %v462_v41, 0.0  ;;  %v465_v48 = vadd.f32 %v706_v42, %v617_v56  ;;  %v497_v50 = vadd.f32 %v730_v43, %v617_v56 }
 0x118   : > { %v514_v52 = vmax.f32 %v494_v45, 0.0 }
 0x119   : > { %666 = vst [vmem:[%s170_s30] sm:$0xff] %v665_v46   ;;  %v518_v54 = vmax.f32 %v502_v44, %v506_v47  ;;  %v507_v55 = vmax.f32 %v465_v48, 0.0  ;;  %v515_v57 = vmax.f32 %v497_v50, 0.0 }
 0x11a   : > { %v522_v58 = vmax.f32 %v510_v49, %v514_v52 }
 0x11b   : > { %v519_v59 = vmax.f32 %v503_v51, %v507_v55  ;;  %v523_v60 = vmax.f32 %v511_v53, %v515_v57 }
 0x11c   : > { %v526_v61 = vmax.f32 %v518_v54, %v522_v58 }
 0x11d   : > { %v527_v62 = vmax.f32 %v519_v59, %v523_v60 }
 0x11e   : > { %v660_v63 = vpack.c.bf16 %v526_v61, %v526_v61 }
 0x11f   : > { %v661_v1 = vpack.c.bf16 %v527_v62, %v527_v62 }
 0x120   : > { %546 = vst [vmem:[%s170_s30 + $0x8] sm:$0xf] %v660_v63 }
 0x121   : > { %v551_v56 = vsel %vm549_vm2, %v661_v1, %v550_v0 }
 0x122   : > { %552 = vst [vmem:[%s170_s30 + $0xc] sm:$0x1] %v551_v56 }
 0x123 PF: > { %s13_s12 = sadd.s32 1, %s801_s12  }
 0x124   : > { %p10_p4 = scmp.ge.s32.totalorder %s13_s12, 4  }
 0x126   :  { %12 = sbr.rel (!%p10_p4) target bundleno = 1 (0x1), region = 62 }

// kernel: lenet_forward.5
= control target key start
LH: loop header
LB: loop body
LE: loop exit
PB: predicated region body
PF: predicated region fallthrough
CT: control target
= control target key end

     0   :  { %v106_v30 = vlaneseq  ;;  %v707_v34 = vmov 1966171168   ;;  %v708_v37 = vmov 0.0   ;;  %s882_s0 = inlined_call_operand.vmem [shape: bf16[2,512], index: 0, kind: input, shape index: {}]   ;;  %s883_s1 = inlined_call_operand.vmem [shape: bf16[512,128], index: 1, kind: input, shape index: {}]   ;;  %s884_s2 = inlined_call_operand.vmem [shape: f32[1,128], index: 2, kind: input, shape index: {}]   ;;  %s885_s3 = inlined_call_operand.vmem [shape: bf16[128,128], index: 3, kind: input, shape index: {}]   ;;  %s886_s4 = inlined_call_operand.vmem [shape: f32[1,128], index: 4, kind: input, shape index: {}]   ;;  %s887_s5 = inlined_call_operand.hbm [shape: f32[2,128], index: 5, kind: output, shape index: {}]  }
   0x1   :  { %v643_v0 = vld [vmem:[%s883_s1 + $0x40] sm:$0xff]   ;;  %v647_v4 = vld [vmem:[%s883_s1 + $0x48] sm:$0xff]   ;;  %v651_v8 = vld [vmem:[%s883_s1 + $0x50] sm:$0xff]   ;;  %v104_v35 = vunpack.c.l.s4 %v707_v34 }
   0x2   :  { %v644_v1 = vld [vmem:[%s883_s1 + $0xc0] sm:$0xff]   ;;  %566 = vmatprep.subr.bf16.mxu0 %v643_v0  ;;  %v648_v5 = vld [vmem:[%s883_s1 + $0xc8] sm:$0xff]   ;;  %v652_v9 = vld [vmem:[%s883_s1 + $0xd0] sm:$0xff]   ;;  %v107_v36 = vshrl.u32 %v106_v30, 7 }
   0x3   :  { %v645_v2 = vld [vmem:[%s883_s1] sm:$0xff]   ;;  %588 = vmatprep.subr.bf16.mxu1 %v644_v1  ;;  %v649_v6 = vld [vmem:[%s883_s1 + $0x8] sm:$0xff]   ;;  %v653_v10 = vld [vmem:[%s883_s1 + $0x10] sm:$0xff]   ;;  %v105_v39 = vunpack.c.0.s8 %v104_v35 }
   0x4   :  { %v646_v3 = vld [vmem:[%s883_s1 + $0x80] sm:$0xff]   ;;  %567 = vmatpush3.bf16.msra.mxu0 %v645_v2  ;;  %v650_v7 = vld [vmem:[%s883_s1 + $0x88] sm:$0xff]   ;;  %v654_v11 = vld [vmem:[%s883_s1 + $0x90] sm:$0xff]  }
   0x5   :  { %589 = vmatpush3.bf16.msra.mxu1 %v646_v3  ;;  %568 = vmatprep.subr.bf16.mxu0 %v647_v4  ;;  %v655_v12 = vld [vmem:[%s883_s1 + $0x58] sm:$0xff]   ;;  %v659_v16 = vld [vmem:[%s883_s1 + $0x60] sm:$0xff]   ;;  %v663_v20 = vld [vmem:[%s883_s1 + $0x68] sm:$0xff]   ;;  %v108_v40 = vsub.s32 %v105_v39, %v107_v36 }
   0x6   :  { %590 = vmatprep.subr.bf16.mxu1 %v648_v5  ;;  %v656_v13 = vld [vmem:[%s883_s1 + $0xd8] sm:$0xff]   ;;  %v660_v17 = vld [vmem:[%s883_s1 + $0xe0] sm:$0xff]   ;;  %v664_v21 = vld [vmem:[%s883_s1 + $0xe8] sm:$0xff]  }
   0x7   :  { %v657_v14 = vld [vmem:[%s883_s1 + $0x18] sm:$0xff]   ;;  %v661_v18 = vld [vmem:[%s883_s1 + $0x20] sm:$0xff]   ;;  %v665_v22 = vld [vmem:[%s883_s1 + $0x28] sm:$0xff]  }
   0x8   :  { %569 = vmatpush3.bf16.msra.mxu0 %v649_v6  ;;  %v658_v15 = vld [vmem:[%s883_s1 + $0x98] sm:$0xff]   ;;  %v662_v19 = vld [vmem:[%s883_s1 + $0xa0] sm:$0xff]   ;;  %v666_v23 = vld [vmem:[%s883_s1 + $0xa8] sm:$0xff]  }
   0x9   :  { %591 = vmatpush3.bf16.msra.mxu1 %v650_v7  ;;  %570 = vmatprep.subr.bf16.mxu0 %v651_v8  ;;  %v667_v24 = vld [vmem:[%s883_s1 + $0x70] sm:$0xff]   ;;  %v671_v28 = vld [vmem:[%s883_s1 + $0x78] sm:$0xff]   ;;  %v524_v33 = vld.sshfl [vmem:[%s882_s0] sm:$0x33 pattern:$0x75316420] }
   0xa   :  { %592 = vmatprep.subr.bf16.mxu1 %v652_v9  ;;  %v668_v25 = vld [vmem:[%s883_s1 + $0xf0] sm:$0xff]   ;;  %v672_v29 = vld [vmem:[%s883_s1 + $0xf8] sm:$0xff]   ;;  %v102_v38 = vcombine.high %v524_v33, %v524_v33  ;;  %v675_v41 = vld [vmem:[%s885_s3] sm:$0xff]   ;;  %v109_v43 = vrot.slane %v524_v33, %v108_v40 }
   0xb   :  { %v669_v26 = vld [vmem:[%s883_s1 + $0x30] sm:$0xff]   ;;  %v673_v31 = vld [vmem:[%s883_s1 + $0x38] sm:$0xff]  }
   0xc   :  { %571 = vmatpush3.bf16.msra.mxu0 %v653_v10  ;;  %v670_v27 = vld [vmem:[%s883_s1 + $0xb0] sm:$0xff]   ;;  %v674_v32 = vld [vmem:[%s883_s1 + $0xb8] sm:$0xff]   ;;  %v116_v42 = vrot.slane %v102_v38, %v108_v40 }
   0xd   :  { %593 = vmatpush3.bf16.msra.mxu1 %v654_v11  ;;  %572 = vmatprep.subr.bf16.mxu0 %v655_v12 }
   0xe   :  { %594 = vmatprep.subr.bf16.mxu1 %v656_v13 }
  0x10   :  { %573 = vmatpush3.bf16.msra.mxu0 %v657_v14 }
  0x11   :  { %595 = vmatpush3.bf16.msra.mxu1 %v658_v15  ;;  %574 = vmatprep.subr.bf16.mxu0 %v659_v16 }
  0x12   :  { %596 = vmatprep.subr.bf16.mxu1 %v660_v17 }
  0x14   :  { %575 = vmatpush3.bf16.msra.mxu0 %v661_v18 }
  0x15   :  { %597 = vmatpush3.bf16.msra.mxu1 %v662_v19  ;;  %576 = vmatprep.subr.bf16.mxu0 %v663_v20 }
  0x16   :  { %598 = vmatprep.subr.bf16.mxu1 %v664_v21 }
  0x18   :  { %577 = vmatpush3.bf16.msra.mxu0 %v665_v22 }
  0x19   :  { %599 = vmatpush3.bf16.msra.mxu1 %v666_v23  ;;  %578 = vmatprep.subr.bf16.mxu0 %v667_v24 }
  0x1a   :  { %600 = vmatprep.subr.bf16.mxu1 %v668_v25 }
  0x1c   :  { %579 = vmatpush3.bf16.msra.mxu0 %v669_v26 }
  0x1d   :  { %601 = vmatpush3.bf16.msra.mxu1 %v670_v27  ;;  %580 = vmatprep.subr.bf16.mxu0 %v671_v28 }
  0x1e   :  { %602 = vmatprep.subr.bf16.mxu1 %v672_v29 }
  0x20   :  { %581 = vmatpush3.bf16.msra.mxu0 %v673_v31 }
  0x21   :  { %603 = vmatpush3.bf16.msra.mxu1 %v674_v32  ;;  %619 = vmatprep.subr.bf16.mxu0 %v708_v37 }
  0x22   :  { %10 = vsyncpa [#allocation3], 0  ;;  %347 = vmatprep.mubr.bf16.mxu0 %v116_v42  ;;  %v118_v44 = vcombine.high %v116_v42, %v116_v42  ;;  %v117_v45 = vcombine.high %v109_v43, %v109_v43  ;;  %v676_v46 = vld [vmem:[%s885_s3 + $0x8] sm:$0xff]   ;;  %v677_v47 = vld [vmem:[%s885_s3 + $0x10] sm:$0xff]   ;;  %vm709_vm0 = vmmov 0   ;;  %s710_s26 = smov [#allocation2]  }
  0x23   :  { %348 = vmatmul.mubr.bf16.vlgmr.msra.gmra.mrb[0].mxu0 %v109_v43  ;;  %v678_v48 = vld [vmem:[%s885_s3 + $0x18] sm:$0xff]   ;;  %v679_v49 = vld [vmem:[%s885_s3 + $0x20] sm:$0xff]   ;;  %v680_v50 = vld [vmem:[%s885_s3 + $0x28] sm:$0xff]  }
  0x24   :  { %387 = vmatprep.mubr.bf16.mxu1 %v118_v44  ;;  %620 = vmatpush3.bf16.msra.mxu0 %v675_v41  ;;  %v681_v51 = vld [vmem:[%s885_s3 + $0x30] sm:$0xff]   ;;  %v682_v52 = vld [vmem:[%s885_s3 + $0x38] sm:$0xff]   ;;  %v523_v54 = vld [vmem:[%s884_s2] ss:$0 sm:$0xff]  ;;  %s515_s2 = sshll.u32 %s710_s26, 4  ;;  %s516_s2 = int_to_ptr.vmem [resolvable:$true] %s515_s2 }
  0x25   :  { %388 = vmatmul.mubr.bf16.vlgmr.msra.gmra.mrb[0].mxu1 %v117_v45  ;;  %621 = vmatprep.subr.bf16.mxu0 %v708_v37  ;;  %v557_v4 = vld [vmem:[%s886_s4] ss:$0 sm:$0xff]  ;;  %s683_s27 = scalar_lea.vmem %s516_s2, 32  ;;  %p688_p1 = scmp.lt.s32.totalorder %s516_s2, %s516_s2 }
  0x26   :  { %635 = vmatprep.mubr.msk.bf16.mxu0 %vm709_vm0, %v708_v37  ;;  %p684_p0 = scmp.ne.s32.totalorder %s516_s2, %s683_s27  ;;  %p689_p2 = scmp.lt.s32.totalorder %s683_s27, %s683_s27 }
  0x28   :  { %622 = vmatpush3.bf16.msra.mxu0 %v676_v46  ;;  %p690_p3 = por %p689_p2, %p688_p1 }
  0x29   :  { %623 = vmatprep.subr.bf16.mxu0 %v708_v37 }
  0x2a   :  { %p691_p4 = pnand %p690_p3, %p684_p0 }
  0x2c   :  { %624 = vmatpush3.bf16.msra.mxu0 %v677_v47 }
  0x2d   :  { %625 = vmatprep.subr.bf16.mxu0 %v708_v37 }
  0x30   :  { %626 = vmatpush3.bf16.msra.mxu0 %v678_v48 }
  0x31   :  { %627 = vmatprep.subr.bf16.mxu0 %v708_v37 }
  0x34   :  { %628 = vmatpush3.bf16.msra.mxu0 %v679_v49 }
  0x35   :  { %629 = vmatprep.subr.bf16.mxu0 %v708_v37 }
  0x38   :  { %630 = vmatpush3.bf16.msra.mxu0 %v680_v50 }
  0x39   :  { %631 = vmatprep.subr.bf16.mxu0 %v708_v37 }
  0x3c   :  { %632 = vmatpush3.bf16.msra.mxu0 %v681_v51 }
  0x3d   :  { %633 = vmatprep.subr.bf16.mxu0 %v708_v37 }
  0x40   :  { %634 = vmatpush3.bf16.msra.mxu0 %v682_v52 }
  0xf6   :  { %v582_v53 = vpop.f32.mrb[0].mxu0 }
  0xf7   :  { %v583_v55 = vpop.f32.mrb[1].mxu0 }
  0xf8   :  { %v604_v56 = vpop.f32.mrb[0].mxu1  ;;  %v584_v57 = vadd.f32 %v583_v55, %v582_v53  ;;  %v585_v58 = vpop.f32.mrb[2].mxu0 }
  0xf9   :  { %v605_v59 = vpop.f32.mrb[1].mxu1  ;;  %v586_v60 = vpop.f32.mrb[3].mxu0 }
  0xfa   :  { %v350_v61 = vadd.f32 %v584_v57, %v523_v54  ;;  %v606_v62 = vadd.f32 %v605_v59, %v604_v56  ;;  %v607_v63 = vpop.f32.mrb[2].mxu1 }
  0xfb   :  { %v608_v0 = vpop.f32.mrb[3].mxu1 }
  0xfc   :  { %v390_v1 = vadd.f32 %v606_v62, %v350_v61 }
  0xfe   :  { %v395_v2 = vmax.f32 %v390_v1, 0.0 }
 0x100   :  { %v396_v3 = vpack.c.bf16 %v395_v2, %v395_v2 }
 0x102   :  { %636 = vmatmul.mubr.bf16.vlgmr.msra.gmra.mrb[4].mxu0 %v396_v3 }
 0x1d5   :  { %v502_v5 = vpop.f32.mrb[4].mxu0 }
 0x1d6   :  { %v503_v6 = vadd.f32 %v557_v4, %v502_v5  ;;  %v637_v7 = vpop.f32.mrb[5].mxu0 }
 0x1d7   :  { %v505_v8 = vpop.f32.mrb[6].mxu0 }
 0x1d8   :  { %508 = vst [vmem:[#allocation2] sm:$0x3] %v503_v6  ;;  %v638_v9 = vpop.f32.mrb[7].mxu0 }
 0x1d9   :  { %694 = shalt.err (!%p691_p4)
}
 0x1da   :  { %s695_s4 = scalar_lea.hbm %s887_s5, 32 }
 0x1db   :  { %p696_p5 = scmp.ne.s32.totalorder %s887_s5, %s695_s4  ;;  %p699_p6 = scmp.lt.u32.totalorder %s695_s4, %s887_s5 }
 0x1dd   :  { %p701_p7 = pnand %p699_p6, %p696_p5 }
 0x1df   :  { %704 = shalt.err (!%p701_p7)
}
 0x1e0   :  { %518 = dma.vmem_to_hbm [thread:$0]  %s516_s2, 32, %s887_s5, [#allocation3]  }
 0x1e1   :  { %705 = dma.done.wait [#allocation3], 32  }
 0x1e2   :  { %706 = vsyncadd [#allocation3], 4294967264 }
 0x1e3   :  { %522 = vsyncpa [#allocation3], 1 }

</bundles_post_ra>
